<compile_context>
chip_gen: v7x
topology: tpu7x:2x2x1
jax: 0.10.0
libtpu: 0.0.40
codegen_flags: <defaults>
</compile_context>

<pallas_src>
import jax
import jax.numpy as jnp
import numpy as np
from jax.experimental import pallas as pl
from jax.experimental.pallas import tpu as pltpu


# -----------------------------------------------------------------------------
# Pallas kernel: one grid step == one batch element.
# -----------------------------------------------------------------------------
def _convlstm_kernel(x_ref, hp_ref, hs_ref, cprev_ref,
                     w_ref, b_ref, wci_ref, wcf_ref, wco_ref,
                     c_out_ref, h_out_ref,
                     zpad_ref):
    _, H, W, C = x_ref.shape
    CP = zpad_ref.shape[-1]          # concat channel dim, lane-padded to 128k
    C4 = 4 * C
    M = H * W                        # matmul rows for this batch element

    # --- zero only the halo ring; the interior is fully overwritten below.
    # (Deliberately NOT guarded by program_id: per-core scratch under megacore
    # must be re-zeroed every step.)
    zpad_ref[:, 0:1, :, :] = jnp.zeros((1, 1, W + 2, CP), jnp.bfloat16)
    zpad_ref[:, H + 1:H + 2, :, :] = jnp.zeros((1, 1, W + 2, CP), jnp.bfloat16)
    zpad_ref[:, :, 0:1, :] = jnp.zeros((1, H + 2, 1, CP), jnp.bfloat16)
    zpad_ref[:, :, W + 1:W + 2, :] = jnp.zeros((1, H + 2, 1, CP), jnp.bfloat16)

    # --- interior: single lane-dense bf16 write of [x | h_prev | h_supp | 0].
    parts = [x_ref[...], hp_ref[...], hs_ref[...]]
    if CP > 3 * C:
        parts.append(jnp.zeros((1, H, W, CP - 3 * C), jnp.bfloat16))
    zpad_ref[:, 1:H + 1, 1:W + 1, :] = jnp.concatenate(parts, axis=-1)

    # --- fused 3x3 "SAME" conv for all four gates: the 3 dx taps are fused
    # into K, so this is 3 bf16 MXU matmuls of (M, 3*CP) x (3*CP, 4C) with
    # f32 accumulation.  (The per-tap slice+reshape is a relayout copy; it is
    # bf16 and lane-dense now.)
    acc = None
    for dy in range(3):
        taps = [zpad_ref[:, dy:dy + H, dx:dx + W, :].reshape(M, CP)
                for dx in range(3)]
        slab = jnp.concatenate(taps, axis=-1)              # (M, 3*CP) bf16
        part = jnp.dot(slab, w_ref[dy], preferred_element_type=jnp.float32)
        acc = part if acc is None else acc + part

    # --- add bias once, then transpose ONCE to a lane-dense (4C, M) layout so
    # the whole gate tail and the output stores use M = H*W lanes instead of
    # quarter-filled C lanes.
    pre = (acc + b_ref[...]).T                             # (4C, M) f32

    c_prev = cprev_ref[0]                                  # (C, M) f32
    i = jax.nn.sigmoid(pre[0:C] + wci_ref[...] * c_prev)
    f = jax.nn.sigmoid(pre[C:2 * C] + wcf_ref[...] * c_prev)
    g = jnp.tanh(pre[2 * C:3 * C])
    c = f * c_prev + i * g
    o = jax.nn.sigmoid(pre[3 * C:4 * C] + wco_ref[...] * c)
    h = o * jnp.tanh(c)

    c_out_ref[0] = c                                       # f32 cell state
    h_out_ref[0] = h.astype(h_out_ref.dtype)               # bf16 hidden state


# -----------------------------------------------------------------------------
# Per-generation VMEM budget (128 MiB v5e/v6e, 64 MiB v7x).
# -----------------------------------------------------------------------------
def _vmem_limit_bytes():
    try:
        cap = pltpu.get_tpu_info().vmem_capacity_bytes
    except Exception:
        return None                     # fall back to the compiler default
    return min(int(cap * 3 // 4), 100 * 1024 * 1024)


# -----------------------------------------------------------------------------
# Wrapper: layout plumbing, gate-weight fusion, pallas_call.
# -----------------------------------------------------------------------------
def query_convlstm_cell(x, c_prev, h_prev, h_supp, params):
    B, C, H, W = x.shape
    HW = H * W
    CP = ((3 * C + 127) // 128) * 128        # concat Cin lane-padded to 128
    C4 = 4 * C

    to_nhwc = lambda a: jnp.transpose(a, (0, 2, 3, 1))
    # MXU operands travel as bf16; cell state / gate elementwise math stay f32.
    x_n = to_nhwc(x).astype(jnp.bfloat16)
    hp_n = to_nhwc(h_prev).astype(jnp.bfloat16)
    hs_n = to_nhwc(h_supp).astype(jnp.bfloat16)
    # c_prev / peepholes / outputs use the channels-major (C, H*W) layout the
    # transposed gate tail wants -- just flattened NCHW, no transpose needed.
    c_n = c_prev.astype(jnp.float32).reshape(B, C, HW)

    # Fuse the 8 gate convs into one (3, 3, 3C, 4C) HWIO weight
    # (Cin = [x | h_prev | h_supp], Cout = [i | f | g | o]); zero-pad Cin to
    # CP and fold the 3 dx taps into K -> (3, 3*CP, 4C) bf16.
    w_x = jnp.concatenate([params["wxi"], params["wxf"],
                           params["wxc"], params["wxo"]], axis=-1)
    w_h = jnp.concatenate([params["whi"], params["whf"],
                           params["whc"], params["who"]], axis=-1)
    w_full = jnp.concatenate([w_x, w_h], axis=2)           # (3, 3, 3C, 4C)
    if CP > 3 * C:
        w_full = jnp.pad(w_full, ((0, 0), (0, 0), (0, CP - 3 * C), (0, 0)))
    w_k = w_full.reshape(3, 3 * CP, C4).astype(jnp.bfloat16)

    b_full = jnp.concatenate(
        [params["bxi"] + params["bhi"], params["bxf"] + params["bhf"],
         params["bxc"] + params["bhc"], params["bxo"] + params["bho"]],
        axis=-1).astype(jnp.float32)                       # (1, 4C)

    wci = params["wci"].reshape(C, HW).astype(jnp.float32)
    wcf = params["wcf"].reshape(C, HW).astype(jnp.float32)
    wco = params["wco"].reshape(C, HW).astype(jnp.float32)

    # One batch element per grid step: B >= 2 always yields >= 2 "parallel"
    # steps, so both v7x TensorCores get work; the MXU M-fill loss is
    # negligible since M just streams through the array.
    # TODO(synk): add spatial (H) halo tiling + per-generation block sizing and
    # pl.Buffered(1) single-buffering of the grid-constant operands for
    # feature maps that no longer fit VMEM (C >= 128, H, W >= 32).
    grid = (B,)

    batched_img = pl.BlockSpec((1, H, W, C), lambda b: (b, 0, 0, 0))
    batched_chw = pl.BlockSpec((1, C, HW), lambda b: (b, 0, 0))
    in_specs = [
        batched_img,                                         # x
        batched_img,                                         # h_prev
        batched_img,                                         # h_supp
        batched_chw,                                         # c_prev
        pl.BlockSpec((3, 3 * CP, C4), lambda b: (0, 0, 0)),  # fused conv weight
        pl.BlockSpec((1, C4), lambda b: (0, 0)),             # fused conv bias
        pl.BlockSpec((C, HW), lambda b: (0, 0)),             # Wci peephole
        pl.BlockSpec((C, HW), lambda b: (0, 0)),             # Wcf peephole
        pl.BlockSpec((C, HW), lambda b: (0, 0)),             # Wco peephole
    ]
    out_specs = (batched_chw, batched_chw)
    out_shape = (jax.ShapeDtypeStruct((B, C, HW), jnp.float32),   # c (f32)
                 jax.ShapeDtypeStruct((B, C, HW), jnp.bfloat16))  # h (bf16)

    c_flat, h_flat = pl.pallas_call(
        _convlstm_kernel,
        out_shape=out_shape,
        grid_spec=pltpu.PrefetchScalarGridSpec(
            num_scalar_prefetch=0,
            grid=grid,
            in_specs=in_specs,
            out_specs=out_specs,
            scratch_shapes=[
                pltpu.VMEM((1, H + 2, W + 2, CP), jnp.bfloat16)],
        ),
        compiler_params=pltpu.CompilerParams(
            dimension_semantics=("parallel",),
            vmem_limit_bytes=_vmem_limit_bytes()),
    )(x_n, hp_n, hs_n, c_n, w_k, b_full, wci, wcf, wco)

    c_out = c_flat.reshape(B, C, H, W)
    # h stays bf16: it only feeds the next step's bf16 conv operand, and the
    # bf16 writeback halves its HBM traffic on the mem-bound roofline.
    h_out = h_flat.reshape(B, C, H, W)
    return c_out, h_out


# -----------------------------------------------------------------------------
# Pure-JAX reference (lax conv) with identical bf16 quantization of the matmul
# operands, f32 accumulation and f32 elementwise math.
# -----------------------------------------------------------------------------
def reference_forward(x, c_prev, h_prev, h_supp, params):
    q = lambda a: a.astype(jnp.bfloat16).astype(jnp.float32)
    to_nhwc = lambda a: jnp.transpose(a, (0, 2, 3, 1)).astype(jnp.float32)
    to_nchw = lambda a: jnp.transpose(a, (0, 3, 1, 2))
    peep = lambda p: jnp.transpose(p, (1, 2, 0))[None].astype(jnp.float32)

    def conv(a, w, b):
        y = jax.lax.conv_general_dilated(
            q(a), q(w), window_strides=(1, 1), padding="SAME",
            dimension_numbers=("NHWC", "HWIO", "NHWC"),
            preferred_element_type=jnp.float32,
            precision=jax.lax.Precision.HIGHEST)
        return y + b.reshape(1, 1, 1, -1)

    x_n = to_nhwc(x)
    c_n = to_nhwc(c_prev)
    h_n = jnp.concatenate([to_nhwc(h_prev), to_nhwc(h_supp)], axis=-1)

    i = jax.nn.sigmoid(conv(x_n, params["wxi"], params["bxi"])
                       + conv(h_n, params["whi"], params["bhi"])
                       + peep(params["wci"]) * c_n)
    f = jax.nn.sigmoid(conv(x_n, params["wxf"], params["bxf"])
                       + conv(h_n, params["whf"], params["bhf"])
                       + peep(params["wcf"]) * c_n)
    g = jnp.tanh(conv(x_n, params["wxc"], params["bxc"])
                 + conv(h_n, params["whc"], params["bhc"]))
    c = f * c_n + i * g
    o = jax.nn.sigmoid(conv(x_n, params["wxo"], params["bxo"])
                       + conv(h_n, params["who"], params["bho"])
                       + peep(params["wco"]) * c)
    h = o * jnp.tanh(c)
    return to_nchw(c), to_nchw(h)


# -----------------------------------------------------------------------------
# Deterministic parameter construction (synthetic init, not a checkpoint).
# -----------------------------------------------------------------------------
def make_params(key, channels, height, width):
    C, H, W = channels, height, width
    keys = jax.random.split(key, 32)
    k = iter(keys)
    u = lambda kk, shape, s=0.1: jax.random.uniform(kk, shape, jnp.float32, -s, s)

    params = {}
    for name, cin in (("wxi", C), ("whi", 2 * C),
                      ("wxf", C), ("whf", 2 * C),
                      ("wxc", C), ("whc", 2 * C),
                      ("wxo", C), ("who", 2 * C)):
        params[name] = u(next(k), (3, 3, cin, C))          # HWIO conv weight
        params["b" + name[1:]] = u(next(k), (1, C))        # conv bias
    # Peephole weights, stored (C, H, W) exactly like the PyTorch module.
    params["wci"] = u(next(k), (C, H, W), 0.3)
    params["wcf"] = u(next(k), (C, H, W), 0.3)
    params["wco"] = u(next(k), (C, H, W), 0.3)
    return params


if __name__ == "__main__":
    B, C, H, W = 2, 32, 8, 8

    key = jax.random.PRNGKey(0)
    k_p, k_x, k_c, k_h, k_s = jax.random.split(key, 5)

    params = make_params(k_p, C, H, W)
    x = jax.random.normal(k_x, (B, C, H, W), jnp.float32)
    c_prev = jax.random.normal(k_c, (B, C, H, W), jnp.float32)
    h_prev = jax.random.normal(k_h, (B, C, H, W), jnp.float32)
    h_supp = jax.random.normal(k_s, (B, C, H, W), jnp.float32)

    fwd = jax.jit(query_convlstm_cell)
    c_out, h_out = fwd(x, c_prev, h_prev, h_supp, params)
    jax.block_until_ready((c_out, h_out))

    c_ref, h_ref = reference_forward(x, c_prev, h_prev, h_supp, params)
    np.testing.assert_allclose(np.asarray(c_out), np.asarray(c_ref),
                               rtol=5e-4, atol=5e-4)
    # h is emitted as bf16 by the kernel -> compare at bf16 precision.
    np.testing.assert_allclose(np.asarray(h_out.astype(jnp.float32)),
                               np.asarray(h_ref), rtol=2e-2, atol=5e-3)

    print("KERNEL_OK")
</pallas_src>

<mosaic_0001>
module attributes {stable_mosaic.version = 11 : i64} {
  func.func @_convlstm_kernel(%arg0: i32, %arg1: memref<1x8x8x32xbf16, #tpu.memory_space<vmem>>, %arg2: memref<1x8x8x32xbf16, #tpu.memory_space<vmem>>, %arg3: memref<1x8x8x32xbf16, #tpu.memory_space<vmem>>, %arg4: memref<1x32x64xf32, #tpu.memory_space<vmem>>, %arg5: memref<3x384x128xbf16, #tpu.memory_space<vmem>>, %arg6: memref<1x128xf32, #tpu.memory_space<vmem>>, %arg7: memref<32x64xf32, #tpu.memory_space<vmem>>, %arg8: memref<32x64xf32, #tpu.memory_space<vmem>>, %arg9: memref<32x64xf32, #tpu.memory_space<vmem>>, %arg10: memref<1x32x64xf32, #tpu.memory_space<vmem>>, %arg11: memref<1x32x64xbf16, #tpu.memory_space<vmem>>, %arg12: memref<1x10x10x128xbf16, #tpu.memory_space<vmem>>) attributes {dimension_semantics = [#tpu.dimension_semantics<parallel>], iteration_bounds = array<i64: 2>, scalar_prefetch = 0 : i64, scratch_operands = 1 : i64, tpu.core_type = #tpu.core_type<tc>, window_params = [{transform_indices = @transform_0, window_bounds = array<i64: 1, 8, 8, 32>}, {transform_indices = @transform_1, window_bounds = array<i64: 1, 8, 8, 32>}, {transform_indices = @transform_2, window_bounds = array<i64: 1, 8, 8, 32>}, {transform_indices = @transform_3, window_bounds = array<i64: 1, 32, 64>}, {pipeline_mode = #tpu.pipeline_mode<synchronous>, transform_indices = @transform_4, window_bounds = array<i64: 3, 384, 128>}, {pipeline_mode = #tpu.pipeline_mode<synchronous>, transform_indices = @transform_5, window_bounds = array<i64: 1, 128>}, {pipeline_mode = #tpu.pipeline_mode<synchronous>, transform_indices = @transform_6, window_bounds = array<i64: 32, 64>}, {pipeline_mode = #tpu.pipeline_mode<synchronous>, transform_indices = @transform_7, window_bounds = array<i64: 32, 64>}, {pipeline_mode = #tpu.pipeline_mode<synchronous>, transform_indices = @transform_8, window_bounds = array<i64: 32, 64>}, {transform_indices = @transform_9, window_bounds = array<i64: 1, 32, 64>}, {transform_indices = @transform_10, window_bounds = array<i64: 1, 32, 64>}]} {
    %cst = arith.constant 0.000000e+00 : bf16
    %0 = vector.broadcast %cst : bf16 to vector<1x1x10x128xbf16>
    %c0 = arith.constant 0 : index
    %c0_0 = arith.constant 0 : index
    %c0_1 = arith.constant 0 : index
    %c0_2 = arith.constant 0 : index
    %1 = vector.load %arg12[%c0, %c0_0, %c0_1, %c0_2] : memref<1x10x10x128xbf16, #tpu.memory_space<vmem>>, vector<1x1x10x128xbf16>
    tpu.vector_store %arg12[%c0, %c0_0, %c0_1, %c0_2], %0 {strides = array<i32>} : memref<1x10x10x128xbf16, #tpu.memory_space<vmem>>, vector<1x1x10x128xbf16>,
    %cst_3 = arith.constant 0.000000e+00 : bf16
    %2 = vector.broadcast %cst_3 : bf16 to vector<1x1x10x128xbf16>
    %c0_4 = arith.constant 0 : index
    %c9 = arith.constant 9 : index
    %c0_5 = arith.constant 0 : index
    %c0_6 = arith.constant 0 : index
    %3 = vector.load %arg12[%c0_4, %c9, %c0_5, %c0_6] : memref<1x10x10x128xbf16, #tpu.memory_space<vmem>>, vector<1x1x10x128xbf16>
    tpu.vector_store %arg12[%c0_4, %c9, %c0_5, %c0_6], %2 {strides = array<i32>} : memref<1x10x10x128xbf16, #tpu.memory_space<vmem>>, vector<1x1x10x128xbf16>,
    %cst_7 = arith.constant 0.000000e+00 : bf16
    %4 = vector.broadcast %cst_7 : bf16 to vector<1x10x1x128xbf16>
    %c0_8 = arith.constant 0 : index
    %c0_9 = arith.constant 0 : index
    %c0_10 = arith.constant 0 : index
    %c0_11 = arith.constant 0 : index
    %5 = vector.load %arg12[%c0_8, %c0_9, %c0_10, %c0_11] : memref<1x10x10x128xbf16, #tpu.memory_space<vmem>>, vector<1x10x1x128xbf16>
    tpu.vector_store %arg12[%c0_8, %c0_9, %c0_10, %c0_11], %4 {strides = array<i32>} : memref<1x10x10x128xbf16, #tpu.memory_space<vmem>>, vector<1x10x1x128xbf16>,
    %cst_12 = arith.constant 0.000000e+00 : bf16
    %6 = vector.broadcast %cst_12 : bf16 to vector<1x10x1x128xbf16>
    %c0_13 = arith.constant 0 : index
    %c0_14 = arith.constant 0 : index
    %c9_15 = arith.constant 9 : index
    %c0_16 = arith.constant 0 : index
    %7 = vector.load %arg12[%c0_13, %c0_14, %c9_15, %c0_16] : memref<1x10x10x128xbf16, #tpu.memory_space<vmem>>, vector<1x10x1x128xbf16>
    tpu.vector_store %arg12[%c0_13, %c0_14, %c9_15, %c0_16], %6 {strides = array<i32>} : memref<1x10x10x128xbf16, #tpu.memory_space<vmem>>, vector<1x10x1x128xbf16>,
    %c0_17 = arith.constant 0 : index
    %c0_18 = arith.constant 0 : index
    %c0_19 = arith.constant 0 : index
    %c0_20 = arith.constant 0 : index
    %8 = vector.load %arg1[%c0_17, %c0_18, %c0_19, %c0_20] : memref<1x8x8x32xbf16, #tpu.memory_space<vmem>>, vector<1x8x8x32xbf16>
    %c0_21 = arith.constant 0 : index
    %c0_22 = arith.constant 0 : index
    %c0_23 = arith.constant 0 : index
    %c0_24 = arith.constant 0 : index
    %9 = vector.load %arg2[%c0_21, %c0_22, %c0_23, %c0_24] : memref<1x8x8x32xbf16, #tpu.memory_space<vmem>>, vector<1x8x8x32xbf16>
    %c0_25 = arith.constant 0 : index
    %c0_26 = arith.constant 0 : index
    %c0_27 = arith.constant 0 : index
    %c0_28 = arith.constant 0 : index
    %10 = vector.load %arg3[%c0_25, %c0_26, %c0_27, %c0_28] : memref<1x8x8x32xbf16, #tpu.memory_space<vmem>>, vector<1x8x8x32xbf16>
    %cst_29 = arith.constant 0.000000e+00 : bf16
    %11 = vector.broadcast %cst_29 : bf16 to vector<1x8x8x32xbf16>
    %12 = tpu.concatenate %8, %9, %10, %11 in 3 : vector<1x8x8x32xbf16>, vector<1x8x8x32xbf16>, vector<1x8x8x32xbf16>, vector<1x8x8x32xbf16> -> vector<1x8x8x128xbf16>
    %c0_30 = arith.constant 0 : index
    %c1 = arith.constant 1 : index
    %c1_31 = arith.constant 1 : index
    %c0_32 = arith.constant 0 : index
    %13 = vector.load %arg12[%c0_30, %c1, %c1_31, %c0_32] : memref<1x10x10x128xbf16, #tpu.memory_space<vmem>>, vector<1x8x8x128xbf16>
    tpu.vector_store %arg12[%c0_30, %c1, %c1_31, %c0_32], %12 {strides = array<i32>} : memref<1x10x10x128xbf16, #tpu.memory_space<vmem>>, vector<1x8x8x128xbf16>,
    %c0_33 = arith.constant 0 : index
    %c0_34 = arith.constant 0 : index
    %c0_35 = arith.constant 0 : index
    %c0_36 = arith.constant 0 : index
    %14 = vector.load %arg12[%c0_33, %c0_34, %c0_35, %c0_36] : memref<1x10x10x128xbf16, #tpu.memory_space<vmem>>, vector<1x8x8x128xbf16>
    %15 = vector.shape_cast %14 : vector<1x8x8x128xbf16> to vector<64x128xbf16>
    %c0_37 = arith.constant 0 : index
    %c0_38 = arith.constant 0 : index
    %c1_39 = arith.constant 1 : index
    %c0_40 = arith.constant 0 : index
    %16 = vector.load %arg12[%c0_37, %c0_38, %c1_39, %c0_40] : memref<1x10x10x128xbf16, #tpu.memory_space<vmem>>, vector<1x8x8x128xbf16>
    %17 = vector.shape_cast %16 : vector<1x8x8x128xbf16> to vector<64x128xbf16>
    %c0_41 = arith.constant 0 : index
    %c0_42 = arith.constant 0 : index
    %c2 = arith.constant 2 : index
    %c0_43 = arith.constant 0 : index
    %18 = vector.load %arg12[%c0_41, %c0_42, %c2, %c0_43] : memref<1x10x10x128xbf16, #tpu.memory_space<vmem>>, vector<1x8x8x128xbf16>
    %19 = vector.shape_cast %18 : vector<1x8x8x128xbf16> to vector<64x128xbf16>
    %20 = tpu.concatenate %15, %17, %19 in 1 : vector<64x128xbf16>, vector<64x128xbf16>, vector<64x128xbf16> -> vector<64x384xbf16>
    %c0_44 = arith.constant 0 : index
    %c0_45 = arith.constant 0 : index
    %c0_46 = arith.constant 0 : index
    %21 = vector.load %arg5[%c0_44, %c0_45, %c0_46] : memref<3x384x128xbf16, #tpu.memory_space<vmem>>, vector<1x384x128xbf16>
    %22 = vector.shape_cast %21 : vector<1x384x128xbf16> to vector<384x128xbf16>
    %cst_47 = arith.constant dense<0.000000e+00> : vector<64x128xf32>
    %23 = tpu.matmul %20, %22, %cst_47 {dimension_numbers = #tpu.dot_dimension_numbers<[1], [0], [0], [1], [0, 0, 1, 1], [], []>} : vector<64x384xbf16>, vector<384x128xbf16>, vector<64x128xf32> -> vector<64x128xf32>
    %c0_48 = arith.constant 0 : index
    %c1_49 = arith.constant 1 : index
    %c0_50 = arith.constant 0 : index
    %c0_51 = arith.constant 0 : index
    %24 = vector.load %arg12[%c0_48, %c1_49, %c0_50, %c0_51] : memref<1x10x10x128xbf16, #tpu.memory_space<vmem>>, vector<1x8x8x128xbf16>
    %25 = vector.shape_cast %24 : vector<1x8x8x128xbf16> to vector<64x128xbf16>
    %c0_52 = arith.constant 0 : index
    %c1_53 = arith.constant 1 : index
    %c1_54 = arith.constant 1 : index
    %c0_55 = arith.constant 0 : index
    %26 = vector.load %arg12[%c0_52, %c1_53, %c1_54, %c0_55] : memref<1x10x10x128xbf16, #tpu.memory_space<vmem>>, vector<1x8x8x128xbf16>
    %27 = vector.shape_cast %26 : vector<1x8x8x128xbf16> to vector<64x128xbf16>
    %c0_56 = arith.constant 0 : index
    %c1_57 = arith.constant 1 : index
    %c2_58 = arith.constant 2 : index
    %c0_59 = arith.constant 0 : index
    %28 = vector.load %arg12[%c0_56, %c1_57, %c2_58, %c0_59] : memref<1x10x10x128xbf16, #tpu.memory_space<vmem>>, vector<1x8x8x128xbf16>
    %29 = vector.shape_cast %28 : vector<1x8x8x128xbf16> to vector<64x128xbf16>
    %30 = tpu.concatenate %25, %27, %29 in 1 : vector<64x128xbf16>, vector<64x128xbf16>, vector<64x128xbf16> -> vector<64x384xbf16>
    %c1_60 = arith.constant 1 : index
    %c0_61 = arith.constant 0 : index
    %c0_62 = arith.constant 0 : index
    %31 = vector.load %arg5[%c1_60, %c0_61, %c0_62] : memref<3x384x128xbf16, #tpu.memory_space<vmem>>, vector<1x384x128xbf16>
    %32 = vector.shape_cast %31 : vector<1x384x128xbf16> to vector<384x128xbf16>
    %cst_63 = arith.constant dense<0.000000e+00> : vector<64x128xf32>
    %33 = tpu.matmul %30, %32, %cst_63 {dimension_numbers = #tpu.dot_dimension_numbers<[1], [0], [0], [1], [0, 0, 1, 1], [], []>} : vector<64x384xbf16>, vector<384x128xbf16>, vector<64x128xf32> -> vector<64x128xf32>
    %34 = arith.addf %23, %33 : vector<64x128xf32>
    %c0_64 = arith.constant 0 : index
    %c2_65 = arith.constant 2 : index
    %c0_66 = arith.constant 0 : index
    %c0_67 = arith.constant 0 : index
    %35 = vector.load %arg12[%c0_64, %c2_65, %c0_66, %c0_67] : memref<1x10x10x128xbf16, #tpu.memory_space<vmem>>, vector<1x8x8x128xbf16>
    %36 = vector.shape_cast %35 : vector<1x8x8x128xbf16> to vector<64x128xbf16>
    %c0_68 = arith.constant 0 : index
    %c2_69 = arith.constant 2 : index
    %c1_70 = arith.constant 1 : index
    %c0_71 = arith.constant 0 : index
    %37 = vector.load %arg12[%c0_68, %c2_69, %c1_70, %c0_71] : memref<1x10x10x128xbf16, #tpu.memory_space<vmem>>, vector<1x8x8x128xbf16>
    %38 = vector.shape_cast %37 : vector<1x8x8x128xbf16> to vector<64x128xbf16>
    %c0_72 = arith.constant 0 : index
    %c2_73 = arith.constant 2 : index
    %c2_74 = arith.constant 2 : index
    %c0_75 = arith.constant 0 : index
    %39 = vector.load %arg12[%c0_72, %c2_73, %c2_74, %c0_75] : memref<1x10x10x128xbf16, #tpu.memory_space<vmem>>, vector<1x8x8x128xbf16>
    %40 = vector.shape_cast %39 : vector<1x8x8x128xbf16> to vector<64x128xbf16>
    %41 = tpu.concatenate %36, %38, %40 in 1 : vector<64x128xbf16>, vector<64x128xbf16>, vector<64x128xbf16> -> vector<64x384xbf16>
    %c2_76 = arith.constant 2 : index
    %c0_77 = arith.constant 0 : index
    %c0_78 = arith.constant 0 : index
    %42 = vector.load %arg5[%c2_76, %c0_77, %c0_78] : memref<3x384x128xbf16, #tpu.memory_space<vmem>>, vector<1x384x128xbf16>
    %43 = vector.shape_cast %42 : vector<1x384x128xbf16> to vector<384x128xbf16>
    %cst_79 = arith.constant dense<0.000000e+00> : vector<64x128xf32>
    %44 = tpu.matmul %41, %43, %cst_79 {dimension_numbers = #tpu.dot_dimension_numbers<[1], [0], [0], [1], [0, 0, 1, 1], [], []>} : vector<64x384xbf16>, vector<384x128xbf16>, vector<64x128xf32> -> vector<64x128xf32>
    %45 = arith.addf %34, %44 : vector<64x128xf32>
    %c0_80 = arith.constant 0 : index
    %c0_81 = arith.constant 0 : index
    %46 = vector.load %arg6[%c0_80, %c0_81] : memref<1x128xf32, #tpu.memory_space<vmem>>, vector<1x128xf32>
    %47 = vector.broadcast %46 : vector<1x128xf32> to vector<64x128xf32>
    %48 = arith.addf %45, %47 : vector<64x128xf32>
    %49 = tpu.transpose %48, [1, 0] : vector<64x128xf32> -> vector<128x64xf32>
    %c0_82 = arith.constant 0 : index
    %c0_83 = arith.constant 0 : index
    %c0_84 = arith.constant 0 : index
    %50 = vector.load %arg4[%c0_82, %c0_83, %c0_84] : memref<1x32x64xf32, #tpu.memory_space<vmem>>, vector<1x32x64xf32>
    %51 = vector.shape_cast %50 : vector<1x32x64xf32> to vector<32x64xf32>
    %52 = vector.extract_strided_slice %49 {offsets = [0, 0], sizes = [32, 64], strides = [1, 1]} : vector<128x64xf32> to vector<32x64xf32>
    %c0_85 = arith.constant 0 : index
    %c0_86 = arith.constant 0 : index
    %53 = vector.load %arg7[%c0_85, %c0_86] : memref<32x64xf32, #tpu.memory_space<vmem>>, vector<32x64xf32>
    %54 = arith.mulf %53, %51 : vector<32x64xf32>
    %55 = arith.addf %52, %54 : vector<32x64xf32>
    %56 = arith.negf %55 : vector<32x64xf32>
    %57 = math.exp %56 : vector<32x64xf32>
    %cst_87 = arith.constant 1.000000e+00 : f32
    %58 = vector.broadcast %cst_87 : f32 to vector<32x64xf32>
    %59 = arith.addf %58, %57 : vector<32x64xf32>
    %60 = arith.divf %58, %59 : vector<32x64xf32>
    %61 = vector.extract_strided_slice %49 {offsets = [32, 0], sizes = [32, 64], strides = [1, 1]} : vector<128x64xf32> to vector<32x64xf32>
    %c0_88 = arith.constant 0 : index
    %c0_89 = arith.constant 0 : index
    %62 = vector.load %arg8[%c0_88, %c0_89] : memref<32x64xf32, #tpu.memory_space<vmem>>, vector<32x64xf32>
    %63 = arith.mulf %62, %51 : vector<32x64xf32>
    %64 = arith.addf %61, %63 : vector<32x64xf32>
    %65 = arith.negf %64 : vector<32x64xf32>
    %66 = math.exp %65 : vector<32x64xf32>
    %cst_90 = arith.constant 1.000000e+00 : f32
    %67 = vector.broadcast %cst_90 : f32 to vector<32x64xf32>
    %68 = arith.addf %67, %66 : vector<32x64xf32>
    %69 = arith.divf %67, %68 : vector<32x64xf32>
    %70 = vector.extract_strided_slice %49 {offsets = [64, 0], sizes = [32, 64], strides = [1, 1]} : vector<128x64xf32> to vector<32x64xf32>
    %71 = math.tanh %70 : vector<32x64xf32>
    %72 = arith.mulf %69, %51 : vector<32x64xf32>
    %73 = arith.mulf %60, %71 : vector<32x64xf32>
    %74 = arith.addf %72, %73 : vector<32x64xf32>
    %75 = vector.extract_strided_slice %49 {offsets = [96, 0], sizes = [32, 64], strides = [1, 1]} : vector<128x64xf32> to vector<32x64xf32>
    %c0_91 = arith.constant 0 : index
    %c0_92 = arith.constant 0 : index
    %76 = vector.load %arg9[%c0_91, %c0_92] : memref<32x64xf32, #tpu.memory_space<vmem>>, vector<32x64xf32>
    %77 = arith.mulf %76, %74 : vector<32x64xf32>
    %78 = arith.addf %75, %77 : vector<32x64xf32>
    %79 = arith.negf %78 : vector<32x64xf32>
    %80 = math.exp %79 : vector<32x64xf32>
    %cst_93 = arith.constant 1.000000e+00 : f32
    %81 = vector.broadcast %cst_93 : f32 to vector<32x64xf32>
    %82 = arith.addf %81, %80 : vector<32x64xf32>
    %83 = arith.divf %81, %82 : vector<32x64xf32>
    %84 = math.tanh %74 : vector<32x64xf32>
    %85 = arith.mulf %83, %84 : vector<32x64xf32>
    %c0_94 = arith.constant 0 : index
    %c0_95 = arith.constant 0 : index
    %c0_96 = arith.constant 0 : index
    %86 = vector.load %arg10[%c0_94, %c0_95, %c0_96] : memref<1x32x64xf32, #tpu.memory_space<vmem>>, vector<1x32x64xf32>
    %87 = vector.shape_cast %86 : vector<1x32x64xf32> to vector<32x64xf32>
    %88 = vector.shape_cast %74 : vector<32x64xf32> to vector<1x32x64xf32>
    tpu.vector_store %arg10[%c0_94, %c0_95, %c0_96], %88 {strides = array<i32>} : memref<1x32x64xf32, #tpu.memory_space<vmem>>, vector<1x32x64xf32>,
    %89 = arith.truncf %85 : vector<32x64xf32> to vector<32x64xbf16>
    %c0_97 = arith.constant 0 : index
    %c0_98 = arith.constant 0 : index
    %c0_99 = arith.constant 0 : index
    %90 = vector.load %arg11[%c0_97, %c0_98, %c0_99] : memref<1x32x64xbf16, #tpu.memory_space<vmem>>, vector<1x32x64xbf16>
    %91 = vector.shape_cast %90 : vector<1x32x64xbf16> to vector<32x64xbf16>
    %92 = vector.shape_cast %89 : vector<32x64xbf16> to vector<1x32x64xbf16>
    tpu.vector_store %arg11[%c0_97, %c0_98, %c0_99], %92 {strides = array<i32>} : memref<1x32x64xbf16, #tpu.memory_space<vmem>>, vector<1x32x64xbf16>,
    return
  }
  func.func @transform_0(%arg0: i32) -> (i32, i32, i32, i32) {
    %c0_i32 = arith.constant 0 : i32
    %c0_i32_0 = arith.constant 0 : i32
    %c0_i32_1 = arith.constant 0 : i32
    %c0_i32_2 = arith.constant 0 : i32
    return %arg0, %c0_i32, %c0_i32_0, %c0_i32_1 : i32, i32, i32, i32
  }
  func.func @transform_1(%arg0: i32) -> (i32, i32, i32, i32) {
    %c0_i32 = arith.constant 0 : i32
    %c0_i32_0 = arith.constant 0 : i32
    %c0_i32_1 = arith.constant 0 : i32
    %c0_i32_2 = arith.constant 0 : i32
    return %arg0, %c0_i32, %c0_i32_0, %c0_i32_1 : i32, i32, i32, i32
  }
  func.func @transform_2(%arg0: i32) -> (i32, i32, i32, i32) {
    %c0_i32 = arith.constant 0 : i32
    %c0_i32_0 = arith.constant 0 : i32
    %c0_i32_1 = arith.constant 0 : i32
    %c0_i32_2 = arith.constant 0 : i32
    return %arg0, %c0_i32, %c0_i32_0, %c0_i32_1 : i32, i32, i32, i32
  }
  func.func @transform_3(%arg0: i32) -> (i32, i32, i32) {
    %c0_i32 = arith.constant 0 : i32
    %c0_i32_0 = arith.constant 0 : i32
    %c0_i32_1 = arith.constant 0 : i32
    return %arg0, %c0_i32, %c0_i32_0 : i32, i32, i32
  }
  func.func @transform_4(%arg0: i32) -> (i32, i32, i32) {
    %c0_i32 = arith.constant 0 : i32
    %c0_i32_0 = arith.constant 0 : i32
    %c0_i32_1 = arith.constant 0 : i32
    %c0_i32_2 = arith.constant 0 : i32
    return %c0_i32, %c0_i32_0, %c0_i32_1 : i32, i32, i32
  }
  func.func @transform_5(%arg0: i32) -> (i32, i32) {
    %c0_i32 = arith.constant 0 : i32
    %c0_i32_0 = arith.constant 0 : i32
    %c0_i32_1 = arith.constant 0 : i32
    return %c0_i32, %c0_i32_0 : i32, i32
  }
  func.func @transform_6(%arg0: i32) -> (i32, i32) {
    %c0_i32 = arith.constant 0 : i32
    %c0_i32_0 = arith.constant 0 : i32
    %c0_i32_1 = arith.constant 0 : i32
    return %c0_i32, %c0_i32_0 : i32, i32
  }
  func.func @transform_7(%arg0: i32) -> (i32, i32) {
    %c0_i32 = arith.constant 0 : i32
    %c0_i32_0 = arith.constant 0 : i32
    %c0_i32_1 = arith.constant 0 : i32
    return %c0_i32, %c0_i32_0 : i32, i32
  }
  func.func @transform_8(%arg0: i32) -> (i32, i32) {
    %c0_i32 = arith.constant 0 : i32
    %c0_i32_0 = arith.constant 0 : i32
    %c0_i32_1 = arith.constant 0 : i32
    return %c0_i32, %c0_i32_0 : i32, i32
  }
  func.func @transform_9(%arg0: i32) -> (i32, i32, i32) {
    %c0_i32 = arith.constant 0 : i32
    %c0_i32_0 = arith.constant 0 : i32
    %c0_i32_1 = arith.constant 0 : i32
    return %arg0, %c0_i32, %c0_i32_0 : i32, i32, i32
  }
  func.func @transform_10(%arg0: i32) -> (i32, i32, i32) {
    %c0_i32 = arith.constant 0 : i32
    %c0_i32_0 = arith.constant 0 : i32
    %c0_i32_1 = arith.constant 0 : i32
    return %arg0, %c0_i32, %c0_i32_0 : i32, i32, i32
  }
}

</mosaic_0001>

<bundles_post_ra>
// kernel: query_convlstm_cell.1
= control target key start
LH: loop header
LB: loop body
LE: loop exit
PB: predicated region body
PF: predicated region fallthrough
CT: control target
= control target key end

     0   :  { %s3658_s13 = smov 0   ;;  %s4498_s0 = inlined_call_operand.vmem [shape: bf16[2,8,8,32], index: 0, kind: input, shape index: {}]   ;;  %s4499_s1 = inlined_call_operand.vmem [shape: bf16[2,8,8,32], index: 1, kind: input, shape index: {}]   ;;  %s4500_s2 = inlined_call_operand.vmem [shape: bf16[2,8,8,32], index: 2, kind: input, shape index: {}]   ;;  %s4501_s3 = inlined_call_operand.vmem [shape: f32[2,32,64], index: 3, kind: input, shape index: {}]   ;;  %s4502_s4 = inlined_call_operand.vmem [shape: bf16[3,384,128], index: 4, kind: input, shape index: {}]   ;;  %s4503_s5 = inlined_call_operand.vmem [shape: f32[1,128], index: 5, kind: input, shape index: {}]   ;;  %s4504_s6 = inlined_call_operand.vmem [shape: f32[32,64], index: 6, kind: input, shape index: {}]   ;;  %s4505_s7 = inlined_call_operand.vmem [shape: f32[32,64], index: 7, kind: input, shape index: {}]   ;;  %s4506_s8 = inlined_call_operand.vmem [shape: f32[32,64], index: 8, kind: input, shape index: {}]   ;;  %s4507_s9 = inlined_call_operand.vmem [shape: f32[2,32,64], index: 9, kind: output, shape index: {0}]   ;;  %s4508_s10 = inlined_call_operand.vmem [shape: bf16[2,32,64], index: 10, kind: output, shape index: {1}]  }
   0x1 LB: > { %s2850_s14 = sadd.s32 4294967295, %s3598_s13   ;;  %p2854_p0 = scmp.ge.s32.totalorder %s3598_s13, 1  ;;  %s3598_s13 = sphi %s3658_s13, %s21_s13  }
   0x2   : > { %p345_p1 = scmp.lt.s32.totalorder %s3598_s13, 3 }
   0x4   : > { %p346_p2 = pnand %p2854_p0, %p345_p1 }
   0x5   : > { %p403_p3 = scmp.lt.s32.totalorder (!%p346_p2), %s2850_s14, 1  ;;  %vm439_vm0 = vcmask (!%p346_p2), 1040384   ;;  %vm440_vm1 = vsmask.f32 (!%p346_p2), 256  ;;  %v445_v1 = vld [vmem:[#allocation2 + $0x8] sm:$0x1] (!%p346_p2) }
   0x6   : > { %349 = sbr.rel (%p346_p2) target bundleno = 688 (0x2b0), region = 56  ;;  %vm3666_vm2 = vmand (!%p346_p2), %vm439_vm0, %vm440_vm1  ;;  %vm472_vm3 = vsmask.f32 (!%p346_p2), 7938  ;;  %v477_v4 = vld [vmem:[#allocation2 + $0xc] sm:$0x1] (!%p346_p2)  ;;  %v3444_v6 = vld [vmem:[%s4502_s4 + $0x100] sm:$0xff] (!%p346_p2)  }
   0x7   : > { %v446_v2 = vsel (!%p346_p2), %vm3666_vm2, 0, %v445_v1  ;;  %vm3675_vm4 = vmand (!%p346_p2), %vm439_vm0, %vm472_vm3  ;;  %v3445_v7 = vld [vmem:[%s4502_s4 + $0x140] sm:$0xff] (!%p346_p2)   ;;  %3148 = vmatprep.subr.bf16.mxu0 (!%p346_p2), %v3444_v6  ;;  %s3600_s26 = smov (!%p346_p2), 64   ;;  %s3601_s27 = smov (!%p346_p2), 32   ;;  %v448_v14 = vld [vmem:[#allocation2 + $0x10] sm:$0x1] (!%p346_p2) }
   0x8   : > { %447 = vst [vmem:[#allocation2 + $0x8] sm:$0x1] (!%p346_p2), %v446_v2  ;;  %v478_v5 = vsel (!%p346_p2), %vm3675_vm4, 0, %v477_v4  ;;  %3304 = vmatprep.subr.bf16.mxu1 (!%p346_p2), %v3445_v7  ;;  %v480_v15 = vld [vmem:[#allocation2 + $0x14] sm:$0x1] (!%p346_p2)  ;;  %v449_v18 = vsel (!%p346_p2), %vm3666_vm2, 0, %v448_v14 }
   0x9   : > { %479 = vst [vmem:[#allocation2 + $0xc] sm:$0x1] (!%p346_p2), %v478_v5  ;;  %3305 = vmatpush3.bf16.msra.mxu1 (!%p346_p2), %v3445_v7  ;;  %v481_v19 = vsel (!%p346_p2), %vm3675_vm4, 0, %v480_v15  ;;  %450 = vst [vmem:[#allocation2 + $0x10] sm:$0x1] (!%p346_p2), %v449_v18  ;;  %v3446_v21 = vld [vmem:[%s4502_s4 + $0xc0] sm:$0xff] (!%p346_p2)  }
   0xa   : > { %482 = vst [vmem:[#allocation2 + $0x14] sm:$0x1] (!%p346_p2), %v481_v19  ;;  %v3447_v22 = vld [vmem:[%s4502_s4 + $0x108] sm:$0xff] (!%p346_p2)   ;;  %3149 = vmatpush3.bf16.msra.mxu0 (!%p346_p2), %v3446_v21  ;;  %v3602_v27 = vmov (!%p346_p2), 0   ;;  %v3450_v28 = vld [vmem:[%s4502_s4 + $0x110] sm:$0xff] (!%p346_p2)   ;;  %v3453_v42 = vld [vmem:[%s4502_s4 + $0x118] sm:$0xff] (!%p346_p2)  }
   0xb   : > { %v3448_v24 = vld [vmem:[%s4502_s4 + $0x148] sm:$0xff] (!%p346_p2)   ;;  %3150 = vmatprep.subr.bf16.mxu0 (!%p346_p2), %v3447_v22  ;;  %434 = vst [vmem:[#allocation2] sm:$0xf] (!%p346_p2), %v3602_v27  ;;  %435 = vst [vmem:[#allocation2 + $0x4] sm:$0x1] (!%p346_p2), %v3602_v27  ;;  %v3451_v29 = vld [vmem:[%s4502_s4 + $0x150] sm:$0xff] (!%p346_p2)  }
   0xc   : > { %v3449_v26 = vld [vmem:[%s4502_s4 + $0xc8] sm:$0xff] (!%p346_p2)   ;;  %437 = vst [vmem:[#allocation2 + $0x48] sm:$0xf] (!%p346_p2), %v3602_v27  ;;  %438 = vst [vmem:[#allocation2 + $0x4c] sm:$0x1] (!%p346_p2), %v3602_v27  ;;  %3306 = vmatprep.subr.bf16.mxu1 (!%p346_p2), %v3448_v24  ;;  %v3452_v36 = vld [vmem:[%s4502_s4 + $0xd0] sm:$0xff] (!%p346_p2)  }
   0xd   : > { %s4520_s14 = smov (!%p403_p3, %s2850_s14), 1  ;;  %3307 = vmatpush3.bf16.msra.mxu1 %v3448_v24  ;;  %v454_v31 = vld [vmem:[#allocation2 + $0x20] sm:$0x1]  ;;  %v486_v34 = vld [vmem:[#allocation2 + $0x24] sm:$0x1]  ;;  %v3454_v44 = vld [vmem:[%s4502_s4 + $0x158] sm:$0xff]  }
   0xe   : > { %s3682_s15 = sshll.u32 %s4520_s14, 5  ;;  %3151 = vmatpush3.bf16.msra.mxu0 %v3449_v26  ;;  %3308 = vmatprep.subr.bf16.mxu1 %v3451_v29  ;;  %v455_v33 = vsel %vm3666_vm2, 0, %v454_v31  ;;  %v451_v35 = vld [vmem:[#allocation2 + $0x18] sm:$0x1]  ;;  %v487_v38 = vsel %vm3675_vm4, 0, %v486_v34  ;;  %v3456_v47 = vld [vmem:[%s4502_s4 + $0x120] sm:$0xff]  }
   0xf   : > { %s3691_s20 = scalar_lea.vmem %s4500_s2, %s3682_s15  ;;  %s3697_s23 = scalar_lea.vmem %s4499_s1, %s3682_s15  ;;  %3152 = vmatprep.subr.bf16.mxu0 %v3450_v28  ;;  %456 = vst [vmem:[#allocation2 + $0x20] sm:$0x1] %v455_v33  ;;  %v452_v39 = vsel %vm3666_vm2, 0, %v451_v35  ;;  %v483_v40 = vld [vmem:[#allocation2 + $0x1c] sm:$0x1]  ;;  %v3457_v48 = vld [vmem:[%s4502_s4 + $0x160] sm:$0xff]  }
  0x10   : > { %v3428_v8 = vld [vmem:[%s3691_s20] ss:$0 sps:$4 sm:$0xff]   ;;  %v3430_v10 = vld [vmem:[%s3691_s20 + $0x4] ss:$0 sps:$4 sm:$0xff]   ;;  %v3432_v12 = vld [vmem:[%s3697_s23 + $0xc] ss:$0 sps:$4 sm:$0xff]   ;;  %s422_s25 = scalar_lea.vmem %s4501_s3, %s3682_s15  ;;  %s4462_s28 = scalar_lea.vmem %s4507_s9, %s3682_s15 }
  0x11   : > { %v3429_v9 = vld [vmem:[%s3697_s23] ss:$0 sps:$4 sm:$0xff]   ;;  %592 = vrot.lane.b32.xlu1 %v3428_v8, %s3600_s26  ;;  %v3431_v11 = vld [vmem:[%s3697_s23 + $0x4] ss:$0 sps:$4 sm:$0xff]   ;;  %v3433_v13 = vld [vmem:[%s3697_s23 + $0x8] ss:$0 sps:$4 sm:$0xff]   ;;  %3309 = vmatpush3.bf16.msra.mxu1 %v3451_v29 }
  0x12   : > { %552 = vrot.lane.b32.xlu0 %v3429_v9, %s3601_s27  ;;  %v3434_v16 = vld [vmem:[%s3691_s20 + $0xc] ss:$0 sps:$4 sm:$0xff]   ;;  %v3435_v17 = vld [vmem:[%s3691_s20 + $0x8] ss:$0 sps:$4 sm:$0xff]   ;;  %v3436_v20 = vld [vmem:[%s3697_s23 + $0x14] ss:$0 sps:$4 sm:$0xff]   ;;  %3153 = vmatpush3.bf16.msra.mxu0 %v3452_v36 }
  0x13   : > { %v3437_v23 = vld [vmem:[%s3697_s23 + $0x10] ss:$0 sps:$4 sm:$0xff]   ;;  %v3438_v25 = vld [vmem:[%s3691_s20 + $0x14] ss:$0 sps:$4 sm:$0xff]   ;;  %v3440_v32 = vld [vmem:[%s3697_s23 + $0x1c] ss:$0 sps:$4 sm:$0xff]   ;;  %3154 = vmatprep.subr.bf16.mxu0 %v3453_v42  ;;  %3310 = vmatprep.subr.bf16.mxu1 %v3454_v44 }
  0x14   : > { %v3439_v30 = vld [vmem:[%s3691_s20 + $0x10] ss:$0 sps:$4 sm:$0xff]   ;;  %v3441_v37 = vld [vmem:[%s3697_s23 + $0x18] ss:$0 sps:$4 sm:$0xff]   ;;  %488 = vst [vmem:[#allocation2 + $0x24] sm:$0x1] %v487_v38  ;;  %s3849_s23 = scalar_lea.vmem %s4498_s0, %s3682_s15 }
  0x15   : > { %594 = vrot.lane.b32.xlu1 %v3430_v10, %s3600_s26  ;;  %453 = vst [vmem:[#allocation2 + $0x18] sm:$0x1] %v452_v39  ;;  %v484_v41 = vsel %vm3675_vm4, 0, %v483_v40  ;;  %v3442_v43 = vld [vmem:[%s3691_s20 + $0x1c] ss:$0 sps:$4 sm:$0xff]   ;;  %3311 = vmatpush3.bf16.msra.mxu1 %v3454_v44  ;;  %v3458_v57 = vld [vmem:[%s4502_s4 + $0xe0] sm:$0xff]  }
  0x16   : > { %554 = vrot.lane.b32.xlu0 %v3431_v11, %s3601_s27  ;;  %485 = vst [vmem:[#allocation2 + $0x1c] sm:$0x1] %v484_v41  ;;  %v3443_v45 = vld [vmem:[%s3691_s20 + $0x18] ss:$0 sps:$4 sm:$0xff]   ;;  %v460_v49 = vld [vmem:[#allocation2 + $0x30] sm:$0x1]  ;;  %3312 = vmatprep.subr.bf16.mxu1 %v3457_v48 }
  0x17   : > { %v3455_v46 = vld [vmem:[%s4502_s4 + $0xd8] sm:$0xff]   ;;  %v492_v50 = vld [vmem:[#allocation2 + $0x34] sm:$0x1]  ;;  %v461_v51 = vsel %vm3666_vm2, 0, %v460_v49  ;;  %v457_v53 = vld [vmem:[#allocation2 + $0x28] sm:$0x1] }
  0x18   : > { %3155 = vmatpush3.bf16.msra.mxu0 %v3455_v46  ;;  %v493_v52 = vsel %vm3675_vm4, 0, %v492_v50  ;;  %462 = vst [vmem:[#allocation2 + $0x30] sm:$0x1] %v461_v51  ;;  %v489_v54 = vld [vmem:[#allocation2 + $0x2c] sm:$0x1]  ;;  %v458_v55 = vsel %vm3666_vm2, 0, %v457_v53 }
  0x19   : > { %558 = vrot.lane.b32.xlu1 %v3432_v12, %s3601_s27  ;;  %3156 = vmatprep.subr.bf16.mxu0 %v3456_v47  ;;  %494 = vst [vmem:[#allocation2 + $0x34] sm:$0x1] %v493_v52  ;;  %v490_v56 = vsel %vm3675_vm4, 0, %v489_v54  ;;  %459 = vst [vmem:[#allocation2 + $0x28] sm:$0x1] %v458_v55  ;;  %v3459_v58 = vld [vmem:[%s4502_s4 + $0x128] sm:$0xff]  }
  0x1a   : > { %556 = vrot.lane.b32.xlu0 %v3433_v13, %s3601_s27  ;;  %491 = vst [vmem:[#allocation2 + $0x2c] sm:$0x1] %v490_v56  ;;  %3313 = vmatpush3.bf16.msra.mxu1 %v3457_v48  ;;  %v3460_v59 = vld [vmem:[%s4502_s4 + $0x168] sm:$0xff]   ;;  %v3462_v61 = vld [vmem:[%s4502_s4 + $0x130] sm:$0xff]   ;;  %v466_v63 = vld [vmem:[#allocation2 + $0x40] sm:$0x1] }
  0x1b   : > { %v3461_v60 = vld [vmem:[%s4502_s4 + $0xe8] sm:$0xff]   ;;  %3314 = vmatprep.subr.bf16.mxu1 %v3460_v59  ;;  %v3463_v62 = vld [vmem:[%s4502_s4 + $0x170] sm:$0xff]   ;;  %v467_v1 = vsel %vm3666_vm2, 0, %v466_v63  ;;  %v498_v4 = vld [vmem:[#allocation2 + $0x44] sm:$0x1]  ;;  %vm608_vm5 = vcmask 261120  }
  0x1c   : > { %3157 = vmatpush3.bf16.msra.mxu0 %v3458_v57  ;;  %v3464_v2 = vld [vmem:[%s4502_s4 + $0xf0] sm:$0xff]   ;;  %468 = vst [vmem:[#allocation2 + $0x40] sm:$0x1] %v467_v1  ;;  %v463_v5 = vld [vmem:[#allocation2 + $0x38] sm:$0x1]  ;;  %v499_v7 = vsel %vm3675_vm4, 0, %v498_v4 }
  0x1d   : > { %598 = vrot.lane.b32.xlu1 %v3434_v16, %s3600_s26  ;;  %3158 = vmatprep.subr.bf16.mxu0 %v3459_v58  ;;  %v495_v6 = vld [vmem:[#allocation2 + $0x3c] sm:$0x1]  ;;  %v464_v8 = vsel %vm3666_vm2, 0, %v463_v5  ;;  %500 = vst [vmem:[#allocation2 + $0x44] sm:$0x1] %v499_v7  ;;  %v3468_v13 = vld [vmem:[%s4502_s4 + $0x40] sm:$0xff]  }
  0x1e   : > { %596 = vrot.lane.b32.xlu0 %v3435_v17, %s3600_s26  ;;  %3315 = vmatpush3.bf16.msra.mxu1 %v3460_v59  ;;  %v496_v9 = vsel %vm3675_vm4, 0, %v495_v6  ;;  %v3465_v10 = vld [vmem:[%s4502_s4 + $0x138] sm:$0xff]   ;;  %465 = vst [vmem:[#allocation2 + $0x38] sm:$0x1] %v464_v8  ;;  %v3834_v14 = vld [vmem:[%s4502_s4 + $0x80] sm:$0xff]   ;;  %vm633_vm6 = vcmask 523264  }
  0x1f   : > { %3316 = vmatprep.subr.bf16.mxu1 %v3463_v62  ;;  %497 = vst [vmem:[#allocation2 + $0x3c] sm:$0x1] %v496_v9  ;;  %v3466_v11 = vld [vmem:[%s4502_s4 + $0x178] sm:$0xff]   ;;  %v442_v15 = vld [vmem:[#allocation2] sm:$0x1]  ;;  %vm650_vm7 = vcmask 785408  }
  0x20   : > { %3159 = vmatpush3.bf16.msra.mxu0 %v3461_v60  ;;  %v3467_v12 = vld [vmem:[%s4502_s4 + $0xf8] sm:$0xff]   ;;  %v474_v16 = vld [vmem:[#allocation2 + $0x4] sm:$0x1]  ;;  %v443_v17 = vsel %vm3666_vm2, 0, %v442_v15  ;;  %v469_v19 = vld [vmem:[#allocation2 + $0x48] sm:$0x1] }
  0x21   : > { %562 = vrot.lane.b32.xlu1 %v3436_v20, %s3601_s27  ;;  %3160 = vmatprep.subr.bf16.mxu0 %v3462_v61  ;;  %v475_v18 = vsel %vm3675_vm4, 0, %v474_v16  ;;  %444 = vst [vmem:[#allocation2] sm:$0x1] %v443_v17  ;;  %v501_v20 = vld [vmem:[#allocation2 + $0x4c] sm:$0x1]  ;;  %v470_v21 = vsel %vm3666_vm2, 0, %v469_v19 }
  0x22   : > { %560 = vrot.lane.b32.xlu0 %v3437_v23, %s3601_s27  ;;  %3317 = vmatpush3.bf16.msra.mxu1 %v3463_v62  ;;  %476 = vst [vmem:[#allocation2 + $0x4] sm:$0x1] %v475_v18  ;;  %v502_v22 = vsel %vm3675_vm4, 0, %v501_v20  ;;  %471 = vst [vmem:[#allocation2 + $0x48] sm:$0x1] %v470_v21  ;;  %vm765_vm8 = vcmask 1043456  }
  0x23   : > { %3318 = vmatprep.subr.bf16.mxu1 %v3466_v11  ;;  %503 = vst [vmem:[#allocation2 + $0x4c] sm:$0x1] %v502_v22  ;;  %v504_v23 = vld [vmem:[%s3849_s23] sm:$0xf]  ;;  %v505_v27 = vld [vmem:[%s3849_s23 + $0x4] sm:$0xf]  ;;  %vm3862_vm9 = vmand %vm765_vm8, %vm472_vm3 }
  0x24   : > { %3161 = vmatpush3.bf16.msra.mxu0 %v3464_v2  ;;  %v507_v40 = vld [vmem:[%s3849_s23 + $0xc] sm:$0xf]  ;;  %v506_v42 = vld [vmem:[%s3849_s23 + $0x8] sm:$0xf]  ;;  %v773_v59 = vld [vmem:[#allocation2 + $0x10] sm:$0xf] }
  0x25   : > { %602 = vrot.lane.b32.xlu1 %v3438_v25, %s3600_s26  ;;  %3162 = vmatprep.subr.bf16.mxu0 %v3465_v10  ;;  %v767_v44 = vld [vmem:[#allocation2 + $0x8] sm:$0xf]  ;;  %v776_v60 = vld [vmem:[#allocation2 + $0x14] sm:$0x1]  ;;  %v3881_v7 = vld [vmem:[#allocation2] sm:$0xe] }
  0x26   : > { %600 = vrot.lane.b32.xlu0 %v3439_v30, %s3600_s26  ;;  %3319 = vmatpush3.bf16.msra.mxu1 %v3466_v11  ;;  %v509_v15 = vld [vmem:[%s3849_s23 + $0x14] sm:$0xf]  ;;  %v508_v17 = vld [vmem:[%s3849_s23 + $0x10] sm:$0xf]  ;;  %vm970_vm10 = vcmask 1042432   ;;  %vm971_vm11 = vcmask 1046532  }
  0x27   : > { %3328 = vmatprep.subr.bf16.mxu1 %v3834_v14  ;;  %v785_v18 = vld [vmem:[#allocation2 + $0x20] sm:$0xf]  ;;  %v2891_v20 = vrot.slane %v3881_v7, 9  ;;  %v788_v22 = vld [vmem:[#allocation2 + $0x24] sm:$0x1]  ;;  %vm3905_vm12 = vmor %vm970_vm10, %vm971_vm11  ;;  %s3143_s18 = sshll.u32 %s4520_s14, 4 }
  0x28   : > { %3163 = vmatpush3.bf16.msra.mxu0 %v3467_v12  ;;  %v3866_v49 = vld [vmem:[#allocation2] sm:$0xf]  ;;  %vm831_vm13 = vsmask.f32 3328  ;;  %vm832_vm14 = vsmask.f32 7440  ;;  %s432_s20 = scalar_lea.vmem %s4508_s10, %s3143_s18 }
  0x29   : > { %566 = vrot.lane.b32.xlu1 %v3440_v32, %s3601_s27  ;;  %3200 = vmatprep.subr.bf16.mxu0 %v3468_v13  ;;  %v835_v63 = vshrl.u32 %v3866_v49, 16  ;;  %v3879_v6 = vld [vmem:[#allocation2 + $0x4] sm:$0x1]  ;;  %v838_v10 = vshll.u32 %v3866_v49, 16  ;;  %vm3963_vm15 = vmor %vm831_vm13, %vm832_vm14  ;;  %vm2721_vm0 = vcmask 519168  }
  0x2a   : > { %564 = vrot.lane.b32.xlu0 %v3441_v37, %s3601_s27  ;;  %v975_v21 = vrot.slane %v3879_v6, 5 }
  0x2d   : > { %606 = vrot.lane.b32.xlu1 %v3442_v43, %s3600_s26 }
  0x2e   : > { %604 = vrot.lane.b32.xlu0 %v3443_v45, %s3600_s26  ;;  %v770_v45 = vld [vmem:[#allocation2 + $0xc] sm:$0x1] }
  0x83   : > { %v593_v24 = vpop.permute.xlu1 %592 }
  0x84   : > { %v553_v25 = vpop.permute.xlu0 %552 }
  0x85   : > { %v611_v26 = vsel %vm608_vm5, %v504_v23, %v553_v25  ;;  %v3892_v25 = vrot.slane %v835_v63, 4 }
  0x86   : > { %v635_v3 = vsel %vm633_vm6, %v611_v26, %v593_v24  ;;  %v844_v26 = vshll.u32 %v3879_v6, 16 }
  0x87   : > { %v652_v28 = vsel %vm650_vm7, %v635_v3, 0  ;;  %v595_v29 = vpop.permute.xlu1 %594  ;;  %v779_v3 = vld [vmem:[#allocation2 + $0x18] sm:$0xf] }
  0x88   : > { %v2883_v30 = vcombine.low %v652_v28, %v652_v28  ;;  %v555_v31 = vpop.permute.xlu0 %554 }
  0x89   : > { %v614_v32 = vsel %vm608_vm5, %v505_v27, %v555_v31  ;;  %v3896_v31 = vrot.slane %v838_v10, 5 }
  0x8a   : > { %v685_v33 = vshrl.u32 %v2883_v30, 16  ;;  %v637_v34 = vsel %vm633_vm6, %v614_v32, %v595_v29  ;;  %v688_v38 = vshll.u32 %v2883_v30, 16 }
  0x8b   : > { %v653_v35 = vsel %vm650_vm7, %v637_v34, 0  ;;  %v559_v36 = vpop.permute.xlu1 %558  ;;  %v782_v34 = vld [vmem:[#allocation2 + $0x1c] sm:$0x1] }
  0x8c   : > { %v687_v37 = vrot.slane %v685_v33, 7  ;;  %v2884_v39 = vcombine.low %v653_v35, %v653_v35  ;;  %v557_v41 = vpop.permute.xlu0 %556  ;;  %v620_v51 = vsel %vm608_vm5, %v507_v40, %v559_v36 }
  0x8d   : > { %v617_v52 = vsel %vm608_vm5, %v506_v42, %v557_v41 }
  0x8e   : > { %v690_v46 = vor.u32 %v688_v38, %v687_v37  ;;  %v691_v47 = vrot.slane %v687_v37, 4  ;;  %v693_v48 = vshrl.u32 %v2884_v39, 16  ;;  %v696_v50 = vshll.u32 %v2884_v39, 16 }
  0x8f   : > { %v599_v53 = vpop.permute.xlu1 %598 }
  0x90   : > { %v768_v54 = vsel %vm3862_vm9, %v690_v46, %v767_v44  ;;  %v771_v55 = vsel %vm3666_vm2, %v691_v47, %v770_v45  ;;  %v695_v56 = vrot.slane %v693_v48, 7  ;;  %v641_v57 = vsel %vm633_vm6, %v620_v51, %v599_v53  ;;  %v597_v58 = vpop.permute.xlu0 %596  ;;  %v511_v44 = vld [vmem:[%s3849_s23 + $0x1c] sm:$0xf]  ;;  %v510_v51 = vld [vmem:[%s3849_s23 + $0x18] sm:$0xf] }
  0x91   : > { %769 = vst [vmem:[#allocation2 + $0x8] sm:$0xf] %v768_v54  ;;  %772 = vst [vmem:[#allocation2 + $0xc] sm:$0x1] %v771_v55  ;;  %v655_v61 = vsel %vm650_vm7, %v641_v57, 0  ;;  %v639_v62 = vsel %vm633_vm6, %v617_v52, %v597_v58 }
  0x92   : > { %v698_v1 = vor.u32 %v696_v50, %v695_v56  ;;  %v699_v2 = vrot.slane %v695_v56, 4  ;;  %v2886_v4 = vcombine.low %v655_v61, %v655_v61  ;;  %v654_v5 = vsel %vm650_vm7, %v639_v62, 0 }
  0x93   : > { %v2885_v8 = vcombine.low %v654_v5, %v654_v5  ;;  %v563_v9 = vpop.permute.xlu1 %562 }
  0x94   : > { %v774_v11 = vsel %vm3862_vm9, %v698_v1, %v773_v59  ;;  %v777_v12 = vsel %vm3666_vm2, %v699_v2, %v776_v60  ;;  %v709_v13 = vshrl.u32 %v2886_v4, 16  ;;  %v561_v16 = vpop.permute.xlu0 %560  ;;  %v712_v24 = vshll.u32 %v2886_v4, 16 }
  0x95   : > { %775 = vst [vmem:[#allocation2 + $0x10] sm:$0xf] %v774_v11  ;;  %778 = vst [vmem:[#allocation2 + $0x14] sm:$0x1] %v777_v12  ;;  %v701_v19 = vshrl.u32 %v2885_v8, 16  ;;  %v704_v28 = vshll.u32 %v2885_v8, 16  ;;  %v626_v29 = vsel %vm608_vm5, %v509_v15, %v563_v9  ;;  %v623_v35 = vsel %vm608_vm5, %v508_v17, %v561_v16 }
  0x96   : > { %v711_v23 = vrot.slane %v709_v13, 7  ;;  %v3928_v2 = vsel %vm3905_vm12, %v2891_v20, %v975_v21  ;;  %v797_v9 = vld [vmem:[#allocation2 + $0x30] sm:$0xf]  ;;  %v800_v15 = vld [vmem:[#allocation2 + $0x34] sm:$0x1] }
  0x97   : > { %v703_v27 = vrot.slane %v701_v19, 7  ;;  %v603_v30 = vpop.permute.xlu1 %602 }
  0x98   : > { %v714_v32 = vor.u32 %v712_v24, %v711_v23  ;;  %v715_v33 = vrot.slane %v711_v23, 4  ;;  %v645_v36 = vsel %vm633_vm6, %v626_v29, %v603_v30  ;;  %v601_v37 = vpop.permute.xlu0 %600  ;;  %v1237_v38 = vld [vmem:[#allocation2 + $0x8] sm:$0xe]  ;;  %v3915_v52 = vld [vmem:[#allocation2 + $0xc] sm:$0x1] }
  0x99   : > { %v706_v39 = vor.u32 %v704_v28, %v703_v27  ;;  %v707_v40 = vrot.slane %v703_v27, 4  ;;  %v657_v41 = vsel %vm650_vm7, %v645_v36, 0  ;;  %v643_v42 = vsel %vm633_vm6, %v623_v35, %v601_v37  ;;  %v3921_v58 = vld [vmem:[#allocation2 + $0x8] sm:$0xf]  ;;  %v794_v24 = vld [vmem:[#allocation2 + $0x2c] sm:$0x1] }
  0x9a   : > { %v786_v46 = vsel %vm3862_vm9, %v714_v32, %v785_v18  ;;  %v789_v47 = vsel %vm3666_vm2, %v715_v33, %v788_v22  ;;  %v2888_v48 = vcombine.low %v657_v41, %v657_v41  ;;  %v656_v50 = vsel %vm650_vm7, %v643_v42, 0  ;;  %v791_v23 = vld [vmem:[#allocation2 + $0x28] sm:$0xf] }
  0x9b   : > { %787 = vst [vmem:[#allocation2 + $0x20] sm:$0xf] %v786_v46  ;;  %790 = vst [vmem:[#allocation2 + $0x24] sm:$0x1] %v789_v47  ;;  %v780_v53 = vsel %vm3862_vm9, %v706_v39, %v779_v3  ;;  %v783_v54 = vsel %vm3666_vm2, %v707_v40, %v782_v34  ;;  %v2887_v55 = vcombine.low %v656_v50, %v656_v50  ;;  %v567_v56 = vpop.permute.xlu1 %566  ;;  %v2911_v57 = vrot.slane %v1237_v38, 9 }
  0x9c   : > { %781 = vst [vmem:[#allocation2 + $0x18] sm:$0xf] %v780_v53  ;;  %784 = vst [vmem:[#allocation2 + $0x1c] sm:$0x1] %v783_v54  ;;  %v725_v59 = vshrl.u32 %v2888_v48, 16  ;;  %v728_v60 = vshll.u32 %v2888_v48, 16  ;;  %v632_v61 = vsel %vm608_vm5, %v511_v44, %v567_v56  ;;  %v565_v62 = vpop.permute.xlu0 %564 }
  0x9d   : > { %v3924_v63 = vld [vmem:[#allocation2 + $0x14] sm:$0x1]  ;;  %v1238_v1 = vld [vmem:[#allocation2 + $0x10] sm:$0xe]  ;;  %v717_v4 = vshrl.u32 %v2887_v55, 16  ;;  %v720_v5 = vshll.u32 %v2887_v55, 16  ;;  %v629_v7 = vsel %vm608_vm5, %v510_v51, %v565_v62 }
  0x9e   : > { %v1263_v8 = vrot.slane %v3915_v52, 5  ;;  %v727_v10 = vrot.slane %v725_v59, 7  ;;  %v2912_v11 = vrot.slane %v1238_v1, 9  ;;  %v1267_v12 = vrot.slane %v3924_v63, 5  ;;  %v3948_v38 = vld [vmem:[#allocation2 + $0x10] sm:$0xf] }
  0x9f   : > { %v1126_v13 = vshrl.u32 %v3921_v58, 16  ;;  %v719_v16 = vrot.slane %v717_v4, 7  ;;  %v607_v17 = vpop.permute.xlu1 %606  ;;  %v1129_v19 = vshll.u32 %v3921_v58, 16  ;;  %v1135_v20 = vshll.u32 %v3915_v52, 16  ;;  %v809_v51 = vld [vmem:[#allocation2 + $0x40] sm:$0xf] }
  0xa0   : > { %v1264_v18 = vsel %vm3905_vm12, %v2911_v57, %v1263_v8  ;;  %v730_v21 = vor.u32 %v728_v60, %v727_v10  ;;  %v731_v22 = vrot.slane %v727_v10, 4  ;;  %v649_v3 = vsel %vm633_vm6, %v632_v61, %v607_v17  ;;  %v605_v27 = vpop.permute.xlu0 %604  ;;  %v812_v52 = vld [vmem:[#allocation2 + $0x44] sm:$0x1]  ;;  %v803_v59 = vld [vmem:[#allocation2 + $0x38] sm:$0xf] }
  0xa1   : > { %v1268_v28 = vsel %vm3905_vm12, %v2912_v11, %v1267_v12  ;;  %v722_v29 = vor.u32 %v720_v5, %v719_v16  ;;  %v723_v30 = vrot.slane %v719_v16, 4  ;;  %v659_v32 = vsel %vm650_vm7, %v649_v3, 0  ;;  %v806_v60 = vld [vmem:[#allocation2 + $0x3c] sm:$0x1] }
  0xa2   : > { %v647_v33 = vsel %vm633_vm6, %v629_v7, %v605_v27  ;;  %v798_v34 = vsel %vm3862_vm9, %v730_v21, %v797_v9  ;;  %v801_v35 = vsel %vm3666_vm2, %v731_v22, %v800_v15  ;;  %v2890_v36 = vcombine.low %v659_v32, %v659_v32  ;;  %v1120_v8 = vld [vmem:[#allocation2 + $0x24] sm:$0x1]  ;;  %v1240_v15 = vld [vmem:[#allocation2 + $0x20] sm:$0xe] }
  0xa3   : > { %v658_v37 = vsel %vm650_vm7, %v647_v33, 0  ;;  %799 = vst [vmem:[#allocation2 + $0x30] sm:$0xf] %v798_v34  ;;  %802 = vst [vmem:[#allocation2 + $0x34] sm:$0x1] %v801_v35  ;;  %v792_v39 = vsel %vm3862_vm9, %v722_v29, %v791_v23  ;;  %v795_v40 = vsel %vm3666_vm2, %v723_v30, %v794_v24  ;;  %v2927_v42 = vcombine.low %v1264_v18, %v1268_v28 }
  0xa4   : > { %v2889_v41 = vcombine.low %v658_v37, %v658_v37  ;;  %793 = vst [vmem:[#allocation2 + $0x28] sm:$0xf] %v792_v39  ;;  %796 = vst [vmem:[#allocation2 + $0x2c] sm:$0x1] %v795_v40  ;;  %v741_v44 = vshrl.u32 %v2890_v36, 16  ;;  %v1128_v46 = vrot.slane %v1126_v13, 4 }
  0xa5   : > { %v1131_v47 = vrot.slane %v1129_v19, 5  ;;  %v1239_v48 = vld [vmem:[#allocation2 + $0x18] sm:$0xe]  ;;  %v3956_v50 = vrot.slane %v844_v26, 5  ;;  %v744_v53 = vshll.u32 %v2890_v36, 16  ;;  %3320 = vmatprep.mubr.bf16.mxu1 %v2927_v42  ;;  %v1140_v56 = vshrl.u32 %v3948_v38, 16 }
  0xa6   : > { %v733_v54 = vshrl.u32 %v2889_v41, 16  ;;  %v736_v55 = vshll.u32 %v2889_v41, 16  ;;  %v743_v57 = vrot.slane %v741_v44, 7  ;;  %v1143_v62 = vshll.u32 %v3948_v38, 16  ;;  %v1119_v4 = vld [vmem:[#allocation2 + $0x1c] sm:$0x1] }
  0xa7   : > { %v1132_v61 = vor.u32 %v1131_v47, %v1128_v46  ;;  %v1149_v1 = vshll.u32 %v3924_v63, 16  ;;  %v1137_v5 = vrot.slane %v1135_v20, 5  ;;  %v1142_v7 = vrot.slane %v1140_v56, 4  ;;  %v3967_v19 = vld [vmem:[#allocation2 + $0x18] sm:$0xf] }
  0xa8   : > { %v735_v6 = vrot.slane %v733_v54, 7  ;;  %v2913_v9 = vrot.slane %v1239_v48, 9  ;;  %v746_v10 = vor.u32 %v744_v53, %v743_v57  ;;  %v747_v11 = vrot.slane %v743_v57, 4  ;;  %v3975_v24 = vld [vmem:[#allocation2 + $0x20] sm:$0xf]  ;;  %v3473_v54 = vld [vmem:[%s4502_s4 + $0x88] sm:$0xff]  }
  0xa9   : > { %v1133_v12 = vrot.slane %v1132_v61, 4  ;;  %v1145_v13 = vrot.slane %v1143_v62, 5  ;;  %v1151_v63 = vrot.slane %v1149_v1, 5  ;;  %v1271_v18 = vrot.slane %v1119_v4, 5  ;;  %v3471_v53 = vld [vmem:[%s4502_s4] sm:$0xff]   ;;  %v3472_v57 = vld [vmem:[%s4502_s4 + $0x48] sm:$0xff]  }
  0xaa   : > { %v738_v16 = vor.u32 %v736_v55, %v735_v6  ;;  %v739_v17 = vrot.slane %v735_v6, 4  ;;  %v810_v21 = vsel %vm3862_vm9, %v746_v10, %v809_v51  ;;  %v813_v20 = vsel %vm3666_vm2, %v747_v11, %v812_v52  ;;  %v3985_v35 = vld [vmem:[#allocation2 + $0x34] sm:$0x1]  ;;  %v1242_v39 = vld [vmem:[#allocation2 + $0x30] sm:$0xe] }
  0xab   : > { %v1138_v22 = vsel %vm3963_vm15, %v1133_v12, %v1137_v5  ;;  %v1146_v23 = vor.u32 %v1145_v13, %v1142_v7  ;;  %811 = vst [vmem:[#allocation2 + $0x40] sm:$0xf] %v810_v21  ;;  %814 = vst [vmem:[#allocation2 + $0x44] sm:$0x1] %v813_v20  ;;  %v1272_v28 = vsel %vm3905_vm12, %v2913_v9, %v1271_v18  ;;  %v2914_v29 = vrot.slane %v1240_v15, 9  ;;  %v3474_v5 = vld [vmem:[%s4502_s4 + $0x8] sm:$0xff]  }
  0xac   : > { %v804_v3 = vsel %vm3862_vm9, %v738_v16, %v803_v59  ;;  %v807_v27 = vsel %vm3666_vm2, %v739_v17, %v806_v60  ;;  %v1275_v32 = vrot.slane %v1120_v8, 5  ;;  %v1154_v33 = vshrl.u32 %v3967_v19, 16  ;;  %v3993_v46 = vld [vmem:[#allocation2 + $0x2c] sm:$0x1]  ;;  %v1241_v47 = vld [vmem:[#allocation2 + $0x28] sm:$0xe] }
  0xad   : > { %805 = vst [vmem:[#allocation2 + $0x38] sm:$0xf] %v804_v3  ;;  %808 = vst [vmem:[#allocation2 + $0x3c] sm:$0x1] %v807_v27  ;;  %v1147_v30 = vrot.slane %v1146_v23, 4  ;;  %v1157_v34 = vshll.u32 %v3967_v19, 16  ;;  %v2919_v51 = vcombine.low %v3921_v58, %v3948_v38 }
  0xae   : > { %v1163_v36 = vshll.u32 %v1119_v4, 16  ;;  %v1168_v43 = vshrl.u32 %v3975_v24, 16  ;;  %v1171_v0 = vshll.u32 %v3975_v24, 16  ;;  %v1177_v37 = vshll.u32 %v1120_v8, 16  ;;  %v4003_v56 = vld [vmem:[#allocation2 + $0x28] sm:$0xf] }
  0xaf   : > { %v1152_v40 = vsel %vm3963_vm15, %v1147_v30, %v1151_v63  ;;  %v1276_v41 = vsel %vm3905_vm12, %v2914_v29, %v1275_v32  ;;  %v1156_v42 = vrot.slane %v1154_v33, 4  ;;  %v1159_v44 = vrot.slane %v1157_v34, 5  ;;  %v4008_v38 = vld [vmem:[#allocation2 + $0x30] sm:$0xf]  ;;  %v947_v63 = vld [vmem:[#allocation2 + $0x8] sm:$0xe] }
  0xb0   : > { %v2923_v48 = vcombine.low %v1138_v22, %v1152_v40  ;;  %v2928_v52 = vcombine.low %v1272_v28, %v1276_v41  ;;  %v1170_v55 = vrot.slane %v1168_v43, 4  ;;  %v1165_v60 = vrot.slane %v1163_v36, 5  ;;  %v3475_v9 = vld [vmem:[%s4502_s4 + $0x50] sm:$0xff]  }
  0xb1   : > { %v1160_v59 = vor.u32 %v1159_v44, %v1156_v42  ;;  %v1173_v61 = vrot.slane %v1171_v0, 5  ;;  %v1179_v58 = vrot.slane %v1177_v37, 5  ;;  %v2915_v62 = vrot.slane %v1241_v47, 9  ;;  %v3476_v10 = vld [vmem:[%s4502_s4 + $0x90] sm:$0xff]   ;;  %v4044_v0 = vld [vmem:[#allocation2 + $0xc] sm:$0x1] }
  0xb2   : > { %1574 = vmatprep.mubr.bf16.mxu0 %v2923_v48  ;;  %3321 = vmatmul.mubr.bf16.vlgmr.msra.gmra.mrb[0].mxu1 %v2928_v52  ;;  %v1279_v1 = vrot.slane %v3993_v46, 5  ;;  %v2916_v4 = vrot.slane %v1242_v39, 9  ;;  %v1283_v6 = vrot.slane %v3985_v35, 5  ;;  %v1182_v11 = vshrl.u32 %v4003_v56, 16  ;;  %v4034_v3 = vld [vmem:[#allocation2 + $0x44] sm:$0x1] }
  0xb3   : > { %1575 = vmatmul.mubr.bf16.vlgmr.msra.gmra.mrb[0].mxu0 %v2919_v51  ;;  %3329 = vmatpush3.bf16.msra.mxu1 %v3834_v14  ;;  %v1161_v7 = vrot.slane %v1160_v59, 4  ;;  %v1174_v8 = vor.u32 %v1173_v61, %v1170_v55  ;;  %v1185_v12 = vshll.u32 %v4003_v56, 16  ;;  %v1191_v15 = vshll.u32 %v3993_v46, 16  ;;  %v1244_v30 = vld [vmem:[#allocation2 + $0x40] sm:$0xe] }
  0xb4   : > { %3201 = vmatpush3.bf16.msra.mxu0 %v3471_v53  ;;  %3330 = vmatprep.subr.bf16.mxu1 %v3473_v54  ;;  %v1280_v14 = vsel %vm3905_vm12, %v2915_v62, %v1279_v1  ;;  %v1284_v13 = vsel %vm3905_vm12, %v2916_v4, %v1283_v6  ;;  %v1196_v16 = vshrl.u32 %v4008_v38, 16  ;;  %v1243_v17 = vld [vmem:[#allocation2 + $0x38] sm:$0xe]  ;;  %v1184_v22 = vrot.slane %v1182_v11, 4  ;;  %v4032_v23 = vld [vmem:[#allocation2 + $0x3c] sm:$0x1] }
  0xb5   : > { %3202 = vmatprep.subr.bf16.mxu0 %v3472_v57  ;;  %v1166_v18 = vsel %vm3963_vm15, %v1161_v7, %v1165_v60  ;;  %v1175_v21 = vrot.slane %v1174_v8, 4  ;;  %v2929_v20 = vcombine.low %v1280_v14, %v1284_v13  ;;  %v1187_v27 = vrot.slane %v1185_v12, 5  ;;  %v4064_v55 = vld [vmem:[#allocation2 + $0x40] sm:$0xf]  ;;  %v3481_v60 = vld [vmem:[%s4502_s4 + $0x18] sm:$0xff]  }
  0xb6   : > { %v1198_v28 = vrot.slane %v1196_v16, 4  ;;  %v1199_v29 = vshll.u32 %v4008_v38, 16  ;;  %v841_v32 = vor.u32 %v3896_v31, %v3892_v25  ;;  %v2920_v34 = vcombine.low %v3967_v19, %v3975_v24  ;;  %v3478_v25 = vld [vmem:[%s4502_s4 + $0x10] sm:$0xff]   ;;  %v3480_v31 = vld [vmem:[%s4502_s4 + $0x98] sm:$0xff]   ;;  %v3483_v62 = vld [vmem:[%s4502_s4 + $0xa0] sm:$0xff]  }
  0xb7   : > { %3331 = vmatpush3.bf16.msra.mxu1 %v3473_v54  ;;  %v1180_v33 = vsel %vm3963_vm15, %v1175_v21, %v1179_v58  ;;  %3324 = vmatprep.mubr.bf16.mxu1 %v2929_v20  ;;  %v1205_v36 = vshll.u32 %v3985_v35, 16  ;;  %v2917_v43 = vrot.slane %v1243_v17, 9  ;;  %v1188_v39 = vor.u32 %v1187_v27, %v1184_v22  ;;  %v4053_v24 = vld [vmem:[#allocation2 + $0x38] sm:$0xf]  ;;  %v4078_v6 = vld [vmem:[#allocation2 + $0x8] sm:$0xf] }
  0xb8   : > { %3203 = vmatpush3.bf16.msra.mxu0 %v3474_v5  ;;  %v2924_v37 = vcombine.low %v1166_v18, %v1180_v33  ;;  %3332 = vmatprep.subr.bf16.mxu1 %v3476_v10  ;;  %v1201_v40 = vrot.slane %v1199_v29, 5  ;;  %v1287_v19 = vrot.slane %v4032_v23, 5  ;;  %v3479_v35 = vld [vmem:[%s4502_s4 + $0x58] sm:$0xff]   ;;  %v1193_v41 = vrot.slane %v1191_v15, 5  ;;  %v3482_v5 = vld [vmem:[%s4502_s4 + $0x60] sm:$0xff]   ;;  %v3486_v16 = vld [vmem:[%s4502_s4 + $0x68] sm:$0xff]  }
  0xb9   : > { %3204 = vmatprep.subr.bf16.mxu0 %v3475_v9  ;;  %v2918_v42 = vrot.slane %v1244_v30, 9  ;;  %v1291_v44 = vrot.slane %v4034_v3, 5  ;;  %v2892_v46 = vrot.slane %v947_v63, 9  ;;  %v1189_v47 = vrot.slane %v1188_v39, 4  ;;  %v3487_v21 = vld [vmem:[%s4502_s4 + $0xa8] sm:$0xff]  }
  0xba   : > { %1582 = vmatprep.mubr.bf16.mxu0 %v2924_v37  ;;  %v1202_v48 = vor.u32 %v1201_v40, %v1198_v28  ;;  %v1288_v51 = vsel %vm3905_vm12, %v2917_v43, %v1287_v19  ;;  %v979_v52 = vrot.slane %v4044_v0, 5  ;;  %v1207_v53 = vrot.slane %v1205_v36, 5  ;;  %v4103_v27 = vld [vmem:[#allocation2 + $0x1c] sm:$0x1]  ;;  %v4105_v28 = vld [vmem:[#allocation2 + $0x10] sm:$0xf] }
  0xbb   : > { %1583 = vmatmul.mubr.bf16.gmra.mrb[4].mxu0 %v2920_v34  ;;  %3333 = vmatpush3.bf16.msra.mxu1 %v3476_v10  ;;  %v1292_v54 = vsel %vm3905_vm12, %v2918_v42, %v1291_v44  ;;  %v1210_v57 = vshrl.u32 %v4053_v24, 16  ;;  %v1213_v59 = vshll.u32 %v4053_v24, 16  ;;  %v1194_v61 = vsel %vm3963_vm15, %v1189_v47, %v1193_v41  ;;  %v4109_v33 = vld [vmem:[#allocation2 + $0x2c] sm:$0x1]  ;;  %v4127_v19 = vld [vmem:[#allocation2 + $0x14] sm:$0x1] }
  0xbc   : > { %3205 = vmatpush3.bf16.msra.mxu0 %v3478_v25  ;;  %3334 = vmatprep.subr.bf16.mxu1 %v3480_v31  ;;  %v1203_v58 = vrot.slane %v1202_v48, 4  ;;  %v2930_v1 = vcombine.low %v1288_v51, %v1292_v54  ;;  %v980_v4 = vsel %vm3905_vm12, %v2892_v46, %v979_v52  ;;  %v4084_v10 = vrot.slane %v841_v32, 4  ;;  %v949_v32 = vld [vmem:[#allocation2 + $0x18] sm:$0xe]  ;;  %v3488_v34 = vld [vmem:[%s4502_s4 + $0x28] sm:$0xff]  }
  0xbd   : > { %3206 = vmatprep.subr.bf16.mxu0 %v3479_v35  ;;  %v2907_v7 = vcombine.low %v3928_v2, %v980_v4  ;;  %v1212_v8 = vrot.slane %v1210_v57, 4  ;;  %v1215_v9 = vrot.slane %v1213_v59, 5  ;;  %v1219_v12 = vshll.u32 %v4032_v23, 16  ;;  %v3485_v2 = vld [vmem:[%s4502_s4 + $0x20] sm:$0xff]   ;;  %v948_v35 = vld [vmem:[#allocation2 + $0x10] sm:$0xe] }
  0xbe   : > { %v1208_v11 = vsel %vm3963_vm15, %v1203_v58, %v1207_v53  ;;  %3325 = vmatmul.mubr.bf16.gmra.mrb[4].mxu1 %v2930_v1  ;;  %v1224_v14 = vshrl.u32 %v4064_v55, 16  ;;  %v1227_v13 = vshll.u32 %v4064_v55, 16  ;;  %v1233_v63 = vshll.u32 %v4034_v3, 16  ;;  %v4131_v47 = vld [vmem:[#allocation2 + $0x24] sm:$0x1]  ;;  %v3492_v4 = vld [vmem:[%s4502_s4 + $0x30] sm:$0xff]  }
  0xbf   : > { %3335 = vmatpush3.bf16.msra.mxu1 %v3480_v31  ;;  %v2925_v15 = vcombine.low %v1194_v61, %v1208_v11  ;;  %3344 = vmatprep.mubr.bf16.mxu1 %v2907_v7  ;;  %v1216_v17 = vor.u32 %v1215_v9, %v1212_v8  ;;  %v849_v18 = vshrl.u32 %v4078_v6, 16  ;;  %v852_v23 = vshll.u32 %v4078_v6, 16  ;;  %v951_v31 = vld [vmem:[#allocation2 + $0x28] sm:$0xe]  ;;  %v950_v48 = vld [vmem:[#allocation2 + $0x20] sm:$0xe] }
  0xc0   : > { %3207 = vmatpush3.bf16.msra.mxu0 %v3481_v60  ;;  %3336 = vmatprep.subr.bf16.mxu1 %v3483_v62  ;;  %v1226_v20 = vrot.slane %v1224_v14, 4  ;;  %v1229_v22 = vrot.slane %v1227_v13, 5  ;;  %v2921_v3 = vcombine.low %v4003_v56, %v4008_v38  ;;  %v1221_v36 = vrot.slane %v1219_v12, 5  ;;  %v3489_v56 = vld [vmem:[%s4502_s4 + $0x70] sm:$0xff]   ;;  %v4135_v52 = vld [vmem:[#allocation2 + $0x18] sm:$0xf] }
  0xc1   : > { %1590 = vmatprep.mubr.bf16.mxu0 %v2925_v15  ;;  %3208 = vmatprep.subr.bf16.mxu0 %v3482_v5  ;;  %v1217_v29 = vrot.slane %v1216_v17, 4  ;;  %v851_v30 = vrot.slane %v849_v18, 4  ;;  %v854_v37 = vrot.slane %v852_v23, 5  ;;  %v858_v25 = vshll.u32 %v4044_v0, 16  ;;  %v3490_v38 = vld [vmem:[%s4502_s4 + $0xb0] sm:$0xff]   ;;  %v3493_v11 = vld [vmem:[%s4502_s4 + $0x78] sm:$0xff]  }
  0xc2   : > { %v1230_v43 = vor.u32 %v1229_v22, %v1226_v20  ;;  %v1235_v39 = vrot.slane %v1233_v63, 5  ;;  %v2922_v40 = vcombine.low %v4053_v24, %v4064_v55  ;;  %v847_v0 = vsel %vm3963_vm15, %v4084_v10, %v3956_v50  ;;  %v4142_v1 = vld [vmem:[#allocation2 + $0x34] sm:$0x1]  ;;  %v952_v10 = vld [vmem:[#allocation2 + $0x30] sm:$0xe]  ;;  %v3494_v12 = vld [vmem:[%s4502_s4 + $0xb8] sm:$0xff]  }
  0xc3   : > { %1591 = vmatmul.mubr.bf16.gmra.mrb[8].mxu0 %v2921_v3  ;;  %3337 = vmatpush3.bf16.msra.mxu1 %v3483_v62  ;;  %v1222_v41 = vsel %vm3963_vm15, %v1217_v29, %v1221_v36  ;;  %v855_v44 = vor.u32 %v854_v37, %v851_v30  ;;  %v2894_v46 = vrot.slane %v949_v32, 9  ;;  %v987_v24 = vrot.slane %v4103_v27, 5  ;;  %v4168_v20 = vld [vmem:[#allocation2 + $0x3c] sm:$0x1]  ;;  %v953_v3 = vld [vmem:[#allocation2 + $0x38] sm:$0xe] }
  0xc4   : > { %3209 = vmatpush3.bf16.msra.mxu0 %v3485_v2  ;;  %3338 = vmatprep.subr.bf16.mxu1 %v3487_v21  ;;  %v1231_v42 = vrot.slane %v1230_v43, 4  ;;  %v2896_v51 = vrot.slane %v951_v31, 9  ;;  %v995_v50 = vrot.slane %v4109_v33, 5  ;;  %v863_v53 = vshrl.u32 %v4105_v28, 16  ;;  %v3495_v32 = vld [vmem:[%s4502_s4 + $0x38] sm:$0xff]  }
  0xc5   : > { %3210 = vmatprep.subr.bf16.mxu0 %v3486_v16  ;;  %v856_v55 = vrot.slane %v855_v44, 4  ;;  %v860_v57 = vrot.slane %v858_v25, 5  ;;  %v2893_v59 = vrot.slane %v948_v35, 9  ;;  %v983_v61 = vrot.slane %v4127_v19, 5  ;;  %v4164_v16 = vld [vmem:[#allocation2 + $0x20] sm:$0xf] }
  0xc6   : > { %v1236_v54 = vsel %vm3963_vm15, %v1231_v42, %v1235_v39  ;;  %v865_v58 = vrot.slane %v863_v53, 4  ;;  %v866_v62 = vshll.u32 %v4105_v28, 16  ;;  %v2895_v7 = vrot.slane %v950_v48, 9  ;;  %v3496_v25 = vld [vmem:[%s4502_s4 + $0x1c0] sm:$0xff]   ;;  %v4199_v48 = vld [vmem:[#allocation2 + $0x1c] sm:$0x1] }
  0xc7   : > { %3339 = vmatpush3.bf16.msra.mxu1 %v3487_v21  ;;  %v2926_v60 = vcombine.low %v1222_v41, %v1236_v54  ;;  %v861_v5 = vsel %vm3963_vm15, %v856_v55, %v860_v57  ;;  %v991_v8 = vrot.slane %v4131_v47, 5  ;;  %v877_v9 = vshrl.u32 %v4135_v52, 16  ;;  %v3499_v35 = vld [vmem:[%s4502_s4 + $0x180] sm:$0xff]   ;;  %v4206_v55 = vld [vmem:[#allocation2 + $0x30] sm:$0xf] }
  0xc8   : > { %3211 = vmatpush3.bf16.msra.mxu0 %v3488_v34  ;;  %3340 = vmatprep.subr.bf16.mxu1 %v3490_v38  ;;  %v988_v14 = vsel %vm3905_vm12, %v2894_v46, %v987_v24  ;;  %v4161_v13 = vsel %vm3905_vm12, %v2896_v51, %v995_v50  ;;  %v868_v15 = vrot.slane %v866_v62, 5  ;;  %v880_v2 = vshll.u32 %v4135_v52, 16  ;;  %v3500_v24 = vld [vmem:[%s4502_s4 + $0x1c8] sm:$0xff]  }
  0xc9   : > { %1598 = vmatprep.mubr.bf16.mxu0 %v2926_v60  ;;  %3212 = vmatprep.subr.bf16.mxu0 %v3489_v56  ;;  %v2903_v17 = vcombine.low %v847_v0, %v861_v5  ;;  %v872_v63 = vshll.u32 %v4127_v19, 16  ;;  %v879_v18 = vrot.slane %v877_v9, 4  ;;  %v886_v21 = vshll.u32 %v4103_v27, 16  ;;  %v3497_v27 = vld [vmem:[%s4502_s4 + $0x200] sm:$0xff]   ;;  %v4188_v19 = vld [vmem:[#allocation2 + $0x28] sm:$0xf] }
  0xca   : > { %v869_v22 = vor.u32 %v868_v15, %v865_v58  ;;  %v882_v23 = vrot.slane %v880_v2, 5  ;;  %v2897_v29 = vrot.slane %v952_v10, 9  ;;  %v999_v30 = vrot.slane %v4142_v1, 5  ;;  %v4212_v60 = vld [vmem:[#allocation2 + $0x14] sm:$0x1]  ;;  %v3501_v5 = vld [vmem:[%s4502_s4 + $0x208] sm:$0xff]  }
  0xcb   : > { %1599 = vmatmul.mubr.bf16.gmra.mrb[12].mxu0 %v2922_v40  ;;  %3341 = vmatpush3.bf16.msra.mxu1 %v3490_v38  ;;  %v984_v34 = vsel %vm3905_vm12, %v2893_v59, %v983_v61  ;;  %v2899_v36 = vcombine.low %v3866_v49, %v4078_v6  ;;  %v992_v43 = vsel %vm3905_vm12, %v2895_v7, %v991_v8  ;;  %v2076_v38 = vld [vmem:[#allocation2 + $0x18] sm:$0xe]  ;;  %v2898_v40 = vrot.slane %v953_v3, 9  ;;  %v2075_v61 = vld [vmem:[#allocation2 + $0x10] sm:$0xe]  ;;  %v3502_v15 = vld [vmem:[%s4502_s4 + $0x188] sm:$0xff]  }
  0xcc   : > { %3213 = vmatpush3.bf16.msra.mxu0 %v3492_v4  ;;  %1848 = vmatprep.mubr.bf16.mxu0 %v2903_v17  ;;  %v2908_v37 = vcombine.low %v984_v34, %v988_v14  ;;  %v2909_v31 = vcombine.low %v992_v43, %v4161_v13  ;;  %v870_v39 = vrot.slane %v869_v22, 4  ;;  %v883_v56 = vor.u32 %v882_v23, %v879_v18  ;;  %v4222_v10 = vld [vmem:[#allocation2 + $0x38] sm:$0xf]  ;;  %v3504_v22 = vld [vmem:[%s4502_s4 + $0x210] sm:$0xff]  }
  0xcd   : > { %3214 = vmatprep.subr.bf16.mxu0 %v3493_v11  ;;  %3342 = vmatprep.subr.bf16.mxu1 %v3494_v12  ;;  %v1003_v0 = vrot.slane %v4168_v20, 5  ;;  %v891_v49 = vshrl.u32 %v4164_v16, 16  ;;  %v894_v6 = vshll.u32 %v4164_v16, 16  ;;  %v874_v41 = vrot.slane %v872_v63, 5 }
  0xce   : > { %v884_v42 = vrot.slane %v883_v56, 4  ;;  %v888_v44 = vrot.slane %v886_v21, 5  ;;  %v4197_v46 = vsel %vm3905_vm12, %v2897_v29, %v999_v30  ;;  %v2900_v51 = vcombine.low %v4105_v28, %v4135_v52  ;;  %v3510_v28 = vld [vmem:[%s4502_s4 + $0x1e0] sm:$0xff]  }
  0xcf   : > { %3343 = vmatpush3.bf16.msra.mxu1 %v3494_v12  ;;  %v3028_v50 = vrot.slane %v2076_v38, 9  ;;  %v893_v53 = vrot.slane %v891_v49, 4  ;;  %v896_v54 = vrot.slane %v894_v6, 5  ;;  %v875_v57 = vsel %vm3963_vm15, %v870_v39, %v874_v41  ;;  %v3506_v39 = vld [vmem:[%s4502_s4 + $0x190] sm:$0xff]   ;;  %v3511_v52 = vld [vmem:[%s4502_s4 + $0x220] sm:$0xff]  }
  0xd0   : > { %3215 = vmatpush3.bf16.msra.mxu0 %v3495_v32  ;;  %3352 = vmatprep.subr.bf16.mxu1 %v3497_v27  ;;  %v889_v59 = vsel %vm3963_vm15, %v884_v42, %v888_v44  ;;  %v905_v58 = vshrl.u32 %v4188_v19, 16  ;;  %v908_v62 = vshll.u32 %v4188_v19, 16  ;;  %v1004_v7 = vsel %vm3905_vm12, %v2898_v40, %v1003_v0 }
  0xd1   : > { %3252 = vmatprep.subr.bf16.mxu0 %v3496_v25  ;;  %v2904_v4 = vcombine.low %v875_v57, %v889_v59  ;;  %v2105_v8 = vrot.slane %v4199_v48, 5  ;;  %v897_v9 = vor.u32 %v896_v54, %v893_v53  ;;  %v914_v14 = vshll.u32 %v4109_v33, 16  ;;  %v3503_v33 = vld [vmem:[%s4502_s4 + $0x1d0] sm:$0xff]   ;;  %v3509_v59 = vld [vmem:[%s4502_s4 + $0x198] sm:$0xff]  }
  0xd2   : > { %3345 = vmatmul.mubr.bf16.vlgmr.msra.gmra.mrb[0].mxu1 %v2908_v37  ;;  %v907_v11 = vrot.slane %v905_v58, 4  ;;  %v910_v12 = vrot.slane %v908_v62, 5  ;;  %v919_v13 = vshrl.u32 %v4206_v55, 16  ;;  %v3027_v2 = vrot.slane %v2075_v61, 9 }
  0xd3   : > { %1849 = vmatmul.mubr.bf16.vlgmr.msra.gmra.mrb[16].mxu0 %v2899_v36  ;;  %3348 = vmatprep.mubr.bf16.mxu1 %v2909_v31  ;;  %v2101_v17 = vrot.slane %v4212_v60, 5  ;;  %v900_v63 = vshll.u32 %v4131_v47, 16  ;;  %v922_v18 = vshll.u32 %v4206_v55, 16  ;;  %v2910_v21 = vcombine.low %v4197_v46, %v1004_v7  ;;  %v4241_v47 = vld [vmem:[#allocation2 + $0x10] sm:$0xf]  ;;  %v3508_v46 = vld [vmem:[%s4502_s4 + $0x218] sm:$0xff]  }
  0xd4   : > { %3253 = vmatpush3.bf16.msra.mxu0 %v3499_v35  ;;  %3353 = vmatpush3.bf16.msra.mxu1 %v3497_v27  ;;  %v911_v23 = vor.u32 %v910_v12, %v907_v11  ;;  %v933_v3 = vshrl.u32 %v4222_v10, 16  ;;  %v936_v29 = vshll.u32 %v4222_v10, 16  ;;  %v2106_v30 = vsel %vm3905_vm12, %v3028_v50, %v2105_v8  ;;  %v4245_v36 = vld [vmem:[#allocation2 + $0x18] sm:$0xf]  ;;  %v4282_v7 = vld [vmem:[#allocation2 + $0x48] sm:$0xe] }
  0xd5   : > { %1856 = vmatprep.mubr.bf16.mxu0 %v2904_v4  ;;  %3254 = vmatprep.subr.bf16.mxu0 %v3500_v24  ;;  %v898_v32 = vrot.slane %v897_v9, 4  ;;  %v921_v34 = vrot.slane %v919_v13, 4  ;;  %v924_v27 = vrot.slane %v922_v18, 5  ;;  %v916_v37 = vrot.slane %v914_v14, 5  ;;  %v3507_v35 = vld [vmem:[%s4502_s4 + $0x1d8] sm:$0xff]   ;;  %v3513_v9 = vld [vmem:[%s4502_s4 + $0x1a0] sm:$0xff]  }
  0xd6   : > { %3354 = vmatprep.subr.bf16.mxu1 %v3501_v5  ;;  %v912_v43 = vrot.slane %v911_v23, 4  ;;  %v935_v25 = vrot.slane %v933_v3, 4  ;;  %v938_v31 = vrot.slane %v936_v29, 5  ;;  %v2102_v56 = vsel %vm3905_vm12, %v3027_v2, %v2101_v17  ;;  %v4284_v8 = vld [vmem:[#allocation2 + $0x28] sm:$0xf]  ;;  %v3517_v29 = vld [vmem:[%s4502_s4 + $0x1f0] sm:$0xff]  }
  0xd7   : > { %v902_v38 = vrot.slane %v900_v63, 5  ;;  %v1964_v40 = vshrl.u32 %v4241_v47, 16  ;;  %v1967_v0 = vshll.u32 %v4241_v47, 16  ;;  %v3043_v49 = vcombine.low %v2102_v56, %v2106_v30  ;;  %v3514_v17 = vld [vmem:[%s4502_s4 + $0x1e8] sm:$0xff]   ;;  %v3518_v30 = vld [vmem:[%s4502_s4 + $0x230] sm:$0xff]  }
  0xd8   : > { %3255 = vmatpush3.bf16.msra.mxu0 %v3502_v15  ;;  %3355 = vmatpush3.bf16.msra.mxu1 %v3501_v5  ;;  %v917_v6 = vsel %vm3963_vm15, %v912_v43, %v916_v37  ;;  %v939_v41 = vor.u32 %v938_v31, %v935_v25  ;;  %v1978_v42 = vshrl.u32 %v4245_v36, 16  ;;  %v925_v24 = vor.u32 %v924_v27, %v921_v34  ;;  %v4280_v5 = vld [vmem:[#allocation2 + $0x20] sm:$0xf]  ;;  %v4291_v15 = vld [vmem:[#allocation2 + $0x48] sm:$0xf] }
  0xd9   : > { %3256 = vmatprep.subr.bf16.mxu0 %v3503_v33  ;;  %3356 = vmatprep.subr.bf16.mxu1 %v3504_v22  ;;  %v903_v44 = vsel %vm3963_vm15, %v898_v32, %v902_v38  ;;  %v942_v50 = vshll.u32 %v4168_v20, 16  ;;  %v928_v54 = vshll.u32 %v4142_v1, 16  ;;  %v1981_v57 = vshll.u32 %v4245_v36, 16  ;;  %v4318_v32 = vld [vmem:[#allocation2 + $0x24] sm:$0x1] }
  0xda   : > { %3349 = vmatmul.mubr.bf16.gmra.mrb[4].mxu1 %v2910_v21  ;;  %v2905_v53 = vcombine.low %v903_v44, %v917_v6  ;;  %v940_v61 = vrot.slane %v939_v41, 4  ;;  %v1966_v58 = vrot.slane %v1964_v40, 4  ;;  %v1969_v62 = vrot.slane %v1967_v0, 5  ;;  %v4320_v34 = vld [vmem:[#allocation2 + $0x2c] sm:$0x1] }
  0xdb   : > { %1857 = vmatmul.mubr.bf16.gmra.mrb[20].mxu0 %v2900_v51  ;;  %3368 = vmatprep.mubr.bf16.mxu1 %v3043_v49  ;;  %v1980_v20 = vrot.slane %v1978_v42, 4  ;;  %v1983_v1 = vrot.slane %v1981_v57, 5  ;;  %v926_v51 = vrot.slane %v925_v24, 4  ;;  %v944_v4 = vrot.slane %v942_v50, 5  ;;  %v4324_v25 = vld [vmem:[#allocation2 + $0x20] sm:$0xe] }
  0xdc   : > { %3257 = vmatpush3.bf16.msra.mxu0 %v3506_v39  ;;  %3357 = vmatpush3.bf16.msra.mxu1 %v3504_v22  ;;  %v930_v11 = vrot.slane %v928_v54, 5  ;;  %v1970_v14 = vor.u32 %v1969_v62, %v1966_v58  ;;  %v2901_v2 = vcombine.low %v4164_v16, %v4188_v19  ;;  %v1973_v63 = vshll.u32 %v4212_v60, 16  ;;  %v3515_v22 = vld [vmem:[%s4502_s4 + $0x228] sm:$0xff]   ;;  %v4326_v0 = vld [vmem:[#allocation2 + $0x38] sm:$0xf]  ;;  %v3520_v54 = vld [vmem:[%s4502_s4 + $0x1b0] sm:$0xff]  }
  0xdd   : > { %1864 = vmatprep.mubr.bf16.mxu0 %v2905_v53  ;;  %3258 = vmatprep.subr.bf16.mxu0 %v3507_v35  ;;  %v945_v12 = vsel %vm3963_vm15, %v940_v61, %v944_v4  ;;  %v1984_v13 = vor.u32 %v1983_v1, %v1980_v20  ;;  %v1992_v18 = vshrl.u32 %v4280_v5, 16  ;;  %v3034_v21 = vrot.slane %v4282_v7, 9  ;;  %v3516_v16 = vld [vmem:[%s4502_s4 + $0x1a8] sm:$0xff]   ;;  %v4330_v41 = vld [vmem:[#allocation2 + $0x3c] sm:$0x1] }
  0xde   : > { %3358 = vmatprep.subr.bf16.mxu1 %v3508_v46  ;;  %v931_v33 = vsel %vm3963_vm15, %v926_v51, %v930_v11  ;;  %v1987_v19 = vshll.u32 %v4199_v48, 16  ;;  %v1995_v23 = vshll.u32 %v4280_v5, 16  ;;  %v2006_v60 = vshrl.u32 %v4284_v8, 16  ;;  %v2078_v31 = vld [vmem:[#allocation2 + $0x28] sm:$0xe]  ;;  %v3521_v58 = vld [vmem:[%s4502_s4 + $0x1f8] sm:$0xff]  }
  0xdf   : > { %v2906_v3 = vcombine.low %v931_v33, %v945_v12  ;;  %v2009_v48 = vshll.u32 %v4284_v8, 16  ;;  %v2062_v27 = vshrl.u32 %v4291_v15, 16  ;;  %v1971_v43 = vrot.slane %v1970_v14, 4  ;;  %v4332_v42 = vld [vmem:[#allocation2 + $0x30] sm:$0xf]  ;;  %v3522_v51 = vld [vmem:[%s4502_s4 + $0x238] sm:$0xff]  }
  0xe0   : > { %3259 = vmatpush3.bf16.msra.mxu0 %v3509_v59  ;;  %3359 = vmatpush3.bf16.msra.mxu1 %v3508_v46  ;;  %v1985_v37 = vrot.slane %v1984_v13, 4  ;;  %v1994_v39 = vrot.slane %v1992_v18, 4  ;;  %v1997_v56 = vrot.slane %v1995_v23, 5  ;;  %v2008_v38 = vrot.slane %v2006_v60, 4  ;;  %v2080_v50 = vld [vmem:[#allocation2 + $0x38] sm:$0xe] }
  0xe1   : > { %3260 = vmatprep.subr.bf16.mxu0 %v3510_v28  ;;  %3360 = vmatprep.subr.bf16.mxu1 %v3511_v52  ;;  %v2011_v40 = vrot.slane %v2009_v48, 5  ;;  %v2902_v49 = vcombine.low %v4206_v55, %v4222_v10  ;;  %v1975_v6 = vrot.slane %v1973_v63, 5  ;;  %v1989_v35 = vrot.slane %v1987_v19, 5  ;;  %v4344_v59 = vld [vmem:[#allocation2 + $0x34] sm:$0x1]  ;;  %v3523_v18 = vld [vmem:[%s4502_s4 + $0x1b8] sm:$0xff]  }
  0xe2   : > { %v3029_v44 = vrot.slane %v4324_v25, 9  ;;  %v2109_v46 = vrot.slane %v4318_v32, 5  ;;  %v3030_v24 = vrot.slane %v2078_v31, 9  ;;  %v2113_v57 = vrot.slane %v4320_v34, 5  ;;  %v2079_v62 = vld [vmem:[#allocation2 + $0x30] sm:$0xe] }
  0xe3   : > { %1865 = vmatmul.mubr.bf16.gmra.mrb[24].mxu0 %v2901_v2  ;;  %v2012_v53 = vor.u32 %v2011_v40, %v2008_v38  ;;  %v1976_v55 = vsel %vm3963_vm15, %v1971_v43, %v1975_v6  ;;  %v1990_v10 = vsel %vm3963_vm15, %v1985_v37, %v1989_v35  ;;  %v2034_v61 = vshrl.u32 %v4326_v0, 16  ;;  %v4359_v2 = vld [vmem:[#allocation2 + $0x4c] sm:$0x1]  ;;  %v4368_v23 = vld [vmem:[#allocation2 + $0x40] sm:$0xf] }
  0xe4   : > { %3261 = vmatpush3.bf16.msra.mxu0 %v3513_v9  ;;  %3361 = vmatpush3.bf16.msra.mxu1 %v3511_v52  ;;  %v1998_v20 = vor.u32 %v1997_v56, %v1994_v39  ;;  %v2015_v28 = vshll.u32 %v4320_v34, 16  ;;  %v2020_v52 = vshrl.u32 %v4332_v42, 16  ;;  %v2023_v1 = vshll.u32 %v4332_v42, 16  ;;  %v1961_v25 = vld [vmem:[#allocation2 + $0x44] sm:$0x1] }
  0xe5   : > { %1872 = vmatprep.mubr.bf16.mxu0 %v2906_v3  ;;  %3262 = vmatprep.subr.bf16.mxu0 %v3514_v17  ;;  %v3032_v4 = vrot.slane %v2080_v50, 9  ;;  %v2121_v9 = vrot.slane %v4330_v41, 5  ;;  %v2001_v11 = vshll.u32 %v4318_v32, 16  ;;  %v2037_v12 = vshll.u32 %v4326_v0, 16  ;;  %v2081_v31 = vld [vmem:[#allocation2 + $0x40] sm:$0xe] }
  0xe6   : > { %3362 = vmatprep.subr.bf16.mxu1 %v3515_v22  ;;  %v3039_v14 = vcombine.low %v1976_v55, %v1990_v10  ;;  %v2013_v13 = vrot.slane %v2012_v53, 4  ;;  %v2036_v17 = vrot.slane %v2034_v61, 4  ;;  %v2065_v63 = vshll.u32 %v4291_v15, 16 }
  0xe7   : > { %v2114_v33 = vsel %vm3905_vm12, %v3030_v24, %v2113_v57  ;;  %v2039_v19 = vrot.slane %v2037_v12, 5  ;;  %v1999_v60 = vrot.slane %v1998_v20, 4  ;;  %v2017_v3 = vrot.slane %v2015_v28, 5 }
  0xe8   : > { %3263 = vmatpush3.bf16.msra.mxu0 %v3516_v16  ;;  %3363 = vmatpush3.bf16.msra.mxu1 %v3515_v22  ;;  %v3031_v22 = vrot.slane %v2079_v62, 9  ;;  %v2117_v16 = vrot.slane %v4344_v59, 5  ;;  %v2025_v32 = vrot.slane %v2023_v1, 5  ;;  %v2122_v34 = vsel %vm3905_vm12, %v3032_v4, %v2121_v9 }
  0xe9   : > { %3264 = vmatprep.subr.bf16.mxu0 %v3517_v29  ;;  %3364 = vmatprep.subr.bf16.mxu1 %v3518_v30  ;;  %v2022_v29 = vrot.slane %v2020_v52, 4  ;;  %v2003_v48 = vrot.slane %v2001_v11, 5  ;;  %v2129_v43 = vrot.slane %v4359_v2, 5  ;;  %v2018_v37 = vsel %vm3963_vm15, %v2013_v13, %v2017_v3 }
  0xea   : > { %v2040_v39 = vor.u32 %v2039_v19, %v2036_v17  ;;  %v2048_v56 = vshrl.u32 %v4368_v23, 16  ;;  %v2051_v38 = vshll.u32 %v4368_v23, 16  ;;  %v2064_v6 = vrot.slane %v2062_v27, 4 }
  0xeb   : > { %1873 = vmatmul.mubr.bf16.gmra.mrb[28].mxu0 %v2902_v49  ;;  %v3035_v49 = vcombine.low %v4241_v47, %v4245_v36  ;;  %v2067_v35 = vrot.slane %v2065_v63, 5  ;;  %v2026_v24 = vor.u32 %v2025_v32, %v2022_v29  ;;  %v2043_v50 = vshll.u32 %v4330_v41, 16 }
  0xec   : > { %3265 = vmatpush3.bf16.msra.mxu0 %v3520_v54  ;;  %3365 = vmatpush3.bf16.msra.mxu1 %v3518_v30  ;;  %v2110_v30 = vsel %vm3905_vm12, %v3029_v44, %v2109_v46  ;;  %v2118_v44 = vsel %vm3905_vm12, %v3031_v22, %v2117_v16  ;;  %v2004_v46 = vsel %vm3963_vm15, %v1999_v60, %v2003_v48  ;;  %v3033_v55 = vrot.slane %v2081_v31, 9 }
  0xed   : > { %2412 = vmatprep.mubr.bf16.mxu0 %v3039_v14  ;;  %3266 = vmatprep.subr.bf16.mxu0 %v3521_v58  ;;  %v3044_v40 = vcombine.low %v2110_v30, %v2114_v33  ;;  %v3045_v53 = vcombine.low %v2118_v44, %v2122_v34  ;;  %v3040_v54 = vcombine.low %v2004_v46, %v2018_v37  ;;  %v2125_v10 = vrot.slane %v1961_v25, 5 }
  0xee   : > { %3366 = vmatprep.subr.bf16.mxu1 %v3522_v51  ;;  %v2029_v47 = vshll.u32 %v4344_v59, 16  ;;  %v2041_v36 = vrot.slane %v2040_v39, 4  ;;  %v2050_v27 = vrot.slane %v2048_v56, 4  ;;  %v2053_v57 = vrot.slane %v2051_v38, 5 }
  0xef   : > { %v2027_v61 = vrot.slane %v2026_v24, 4  ;;  %v2045_v58 = vrot.slane %v2043_v50, 5  ;;  %v2126_v62 = vsel %vm3905_vm12, %v3033_v55, %v2125_v10  ;;  %v2130_v41 = vsel %vm3905_vm12, %v3034_v21, %v2129_v43 }
  0xf0   : > { %3267 = vmatpush3.bf16.msra.mxu0 %v3523_v18  ;;  %3367 = vmatpush3.bf16.msra.mxu1 %v3522_v51  ;;  %v2071_v20 = vshll.u32 %v4359_v2, 16  ;;  %v2031_v28 = vrot.slane %v2029_v47, 5  ;;  %v2054_v52 = vor.u32 %v2053_v57, %v2050_v27  ;;  %v2068_v1 = vor.u32 %v2067_v35, %v2064_v6 }
  0xf1   : > { %v2046_v59 = vsel %vm3963_vm15, %v2041_v36, %v2045_v58  ;;  %v3046_v51 = vcombine.low %v2126_v62, %v2130_v41  ;;  %v3036_v4 = vcombine.low %v4280_v5, %v4284_v8  ;;  %v2057_v11 = vshll.u32 %v1961_v25, 16 }
  0xf2   : > { %v2032_v9 = vsel %vm3963_vm15, %v2027_v61, %v2031_v28  ;;  %v2055_v45 = vrot.slane %v2054_v52, 4  ;;  %v2069_v21 = vrot.slane %v2068_v1, 4  ;;  %v2073_v12 = vrot.slane %v2071_v20, 5 }
  0xf3   : > { %3369 = vmatmul.mubr.bf16.vlgmr.msra.gmra.mrb[0].mxu1 %v3044_v40  ;;  %2413 = vmatmul.mubr.bf16.vlgmr.msra.gmra.mrb[32].mxu0 %v3035_v49  ;;  %v3041_v7 = vcombine.low %v2032_v9, %v2046_v59  ;;  %v2059_v14 = vrot.slane %v2057_v11, 5  ;;  %v3037_v5 = vcombine.low %v4332_v42, %v4326_v0  ;;  %v3038_v17 = vcombine.low %v4368_v23, %v4291_v15 }
  0xf4   : > { %3372 = vmatprep.mubr.bf16.mxu1 %v3045_v53  ;;  %2420 = vmatprep.mubr.bf16.mxu0 %v3040_v54  ;;  %v2074_v2 = vsel %vm3963_vm15, %v2069_v21, %v2073_v12 }
  0xf5   : > { %v2060_v13 = vsel %vm3963_vm15, %v2055_v45, %v2059_v14 }
  0xf6   : > { %v3042_v8 = vcombine.low %v2060_v13, %v2074_v2 }
  0xfb   : > { %3373 = vmatmul.mubr.bf16.gmra.mrb[4].mxu1 %v3046_v51  ;;  %2421 = vmatmul.mubr.bf16.gmra.mrb[36].mxu0 %v3036_v4 }
  0xfc   : > { %2428 = vmatprep.mubr.bf16.mxu0 %v3041_v7 }
 0x103   : > { %2429 = vmatmul.mubr.bf16.gmra.mrb[40].mxu0 %v3037_v5 }
 0x104   : > { %2436 = vmatprep.mubr.bf16.mxu0 %v3042_v8 }
 0x10b   : > { %2437 = vmatmul.mubr.bf16.gmra.mrb[44].mxu0 %v3038_v17 }
 0x186   : > { %v3164_v63 = vpop.f32.mrb[0].mxu0 }
 0x187   : > { %v3165_v18 = vpop.f32.mrb[1].mxu0 }
 0x188   : > { %v3166_v33 = vadd.f32 %v3165_v18, %v3164_v63  ;;  %v3167_v22 = vpop.f32.mrb[2].mxu0 }
 0x189   : > { %v3168_v16 = vpop.f32.mrb[3].mxu0 }
 0x18a   : > { %v3169_v19 = vadd.f32 %v3168_v16, %v3167_v22  ;;  %v3119_v22 = vld [vmem:[%s4503_s5] ss:$0 sm:$0xff] }
 0x18e   : > { %v3170_v60 = vpop.f32.mrb[4].mxu0 }
 0x18f   : > { %v3171_v3 = vpop.f32.mrb[5].mxu0 }
 0x190   : > { %v3172_v26 = vadd.f32 %v3171_v3, %v3170_v60  ;;  %v3173_v29 = vpop.f32.mrb[6].mxu0 }
 0x191   : > { %v3174_v32 = vpop.f32.mrb[7].mxu0 }
 0x192   : > { %v3175_v30 = vadd.f32 %v3174_v32, %v3173_v29 }
 0x196   : > { %v3176_v0 = vpop.f32.mrb[8].mxu0 }
 0x197   : > { %v3177_v42 = vpop.f32.mrb[9].mxu0 }
 0x198   : > { %v3178_v34 = vadd.f32 %v3177_v42, %v3176_v0  ;;  %v3179_v48 = vpop.f32.mrb[10].mxu0 }
 0x199   : > { %v3180_v43 = vpop.f32.mrb[11].mxu0 }
 0x19a   : > { %v3181_v37 = vadd.f32 %v3180_v43, %v3179_v48 }
 0x19e   : > { %v3182_v15 = vpop.f32.mrb[12].mxu0 }
 0x19f   : > { %v3183_v23 = vpop.f32.mrb[13].mxu0 }
 0x1a0   : > { %v3184_v25 = vadd.f32 %v3183_v23, %v3182_v15  ;;  %v3185_v31 = vpop.f32.mrb[14].mxu0 }
 0x1a1   : > { %v3186_v39 = vpop.f32.mrb[15].mxu0 }
 0x1a2   : > { %v3187_v56 = vadd.f32 %v3186_v39, %v3185_v31 }
 0x1a6   : > { %v3216_v38 = vpop.f32.mrb[16].mxu0 }
 0x1a7   : > { %v3217_v40 = vpop.f32.mrb[17].mxu0 }
 0x1a8   : > { %v3218_v49 = vadd.f32 %v3217_v40, %v3216_v38  ;;  %v3219_v6 = vpop.f32.mrb[18].mxu0 }
 0x1a9   : > { %v3220_v35 = vpop.f32.mrb[19].mxu0 }
 0x1aa   : > { %v3379_v44 = vadd.f32 %v3218_v49, %v3166_v33  ;;  %v3221_v46 = vadd.f32 %v3220_v35, %v3219_v6 }
 0x1ac   : > { %v3385_v24 = vadd.f32 %v3221_v46, %v3169_v19 }
 0x1ae   : > { %v3222_v50 = vpop.f32.mrb[20].mxu0 }
 0x1af   : > { %v3223_v53 = vpop.f32.mrb[21].mxu0 }
 0x1b0   : > { %v3224_v54 = vadd.f32 %v3223_v53, %v3222_v50  ;;  %v3225_v55 = vpop.f32.mrb[22].mxu0 }
 0x1b1   : > { %v3226_v10 = vpop.f32.mrb[23].mxu0 }
 0x1b2   : > { %v3376_v47 = vadd.f32 %v3224_v54, %v3172_v26  ;;  %v3227_v36 = vadd.f32 %v3226_v10, %v3225_v55 }
 0x1b4   : > { %v3382_v27 = vadd.f32 %v3227_v36, %v3175_v30 }
 0x1b6   : > { %v3228_v57 = vpop.f32.mrb[24].mxu0 }
 0x1b7   : > { %v3229_v61 = vpop.f32.mrb[25].mxu0 }
 0x1b8   : > { %v3230_v58 = vadd.f32 %v3229_v61, %v3228_v57  ;;  %v3231_v62 = vpop.f32.mrb[26].mxu0 }
 0x1b9   : > { %v3232_v41 = vpop.f32.mrb[27].mxu0 }
 0x1ba   : > { %v3391_v20 = vadd.f32 %v3230_v58, %v3178_v34  ;;  %v3233_v28 = vadd.f32 %v3232_v41, %v3231_v62 }
 0x1bc   : > { %v3397_v59 = vadd.f32 %v3233_v28, %v3181_v37 }
 0x1be   : > { %v3234_v52 = vpop.f32.mrb[28].mxu0 }
 0x1bf   : > { %v3235_v1 = vpop.f32.mrb[29].mxu0 }
 0x1c0   : > { %v3236_v51 = vadd.f32 %v3235_v1, %v3234_v52  ;;  %v3237_v4 = vpop.f32.mrb[30].mxu0  ;;  %v4417_v1 = vld [vmem:[%s422_s25] sm:$0xff] }
 0x1c1   : > { %v3238_v9 = vpop.f32.mrb[31].mxu0 }
 0x1c2   : > { %v3388_v11 = vadd.f32 %v3236_v51, %v3184_v25  ;;  %v3239_v7 = vadd.f32 %v3238_v9, %v3237_v4  ;;  %v2569_v51 = vld [vmem:[%s4504_s6] sm:$0xff] }
 0x1c3   : > { %v2573_v9 = vmul.f32 %v2569_v51, %v4417_v1 }
 0x1c4   : > { %v3394_v45 = vadd.f32 %v3239_v7, %v3187_v56  ;;  %v2570_v7 = vld [vmem:[%s4504_s6 + $0x8] sm:$0xff] }
 0x1c6   : > { %v3370_v21 = vpop.f32.mrb[0].mxu1  ;;  %v3268_v12 = vpop.f32.mrb[32].mxu0 }
 0x1c7   : > { %v2479_v14 = vpop.f32.mrb[1].mxu1  ;;  %v3269_v13 = vpop.f32.mrb[33].mxu0 }
 0x1c8   : > { %v3270_v2 = vadd.f32 %v3269_v13, %v3268_v12  ;;  %v3371_v5 = vpop.f32.mrb[2].mxu1  ;;  %v3271_v8 = vpop.f32.mrb[34].mxu0  ;;  %v2571_v13 = vld [vmem:[%s4504_s6 + $0x10] sm:$0xff] }
 0x1c9   : > { %v2482_v17 = vpop.f32.mrb[3].mxu1  ;;  %v3272_v63 = vpop.f32.mrb[35].mxu0 }
 0x1ca   : > { %v3380_v18 = vadd.f32 %v3379_v44, %v3270_v2  ;;  %v3273_v33 = vadd.f32 %v3272_v63, %v3271_v8 }
 0x1cc   : > { %v3386_v16 = vadd.f32 %v3385_v24, %v3273_v33  ;;  %v3381_v19 = vadd.f32 %v3380_v18, %v2479_v14  ;;  %v4429_v14 = vld [vmem:[%s422_s25 + $0x10] sm:$0xff]  ;;  %v4438_v18 = vld [vmem:[%s422_s25 + $0x18] sm:$0xff] }
 0x1cd   : > { %v2575_v63 = vmul.f32 %v2571_v13, %v4429_v14  ;;  %v2572_v33 = vld [vmem:[%s4504_s6 + $0x18] sm:$0xff]  ;;  %v2657_v13 = vld [vmem:[%s4506_s8] sm:$0xff] }
 0x1ce   : > { %v3387_v60 = vadd.f32 %v3386_v16, %v2482_v17  ;;  %v3374_v3 = vpop.f32.mrb[4].mxu1  ;;  %v3274_v26 = vpop.f32.mrb[36].mxu0  ;;  %v2525_v29 = vadd.f32 %v3381_v19, %v3119_v22  ;;  %v2606_v19 = vld [vmem:[%s4505_s7 + $0x8] sm:$0xff] }
 0x1cf   : > { %v2495_v32 = vpop.f32.mrb[5].mxu1  ;;  %v3275_v30 = vpop.f32.mrb[37].mxu0 }
 0x1d0   : > { %v3276_v0 = vadd.f32 %v3275_v30, %v3274_v26  ;;  %v3375_v42 = vpop.f32.mrb[6].mxu1  ;;  %v3277_v34 = vpop.f32.mrb[38].mxu0  ;;  %2533 = vxpose.xlu0.b32.start [1/8] (short) %v2525_v29, 128  ;;  %v2526_v23 = vadd.f32 %v3387_v60, %v3119_v22  ;;  %v2576_v26 = vmul.f32 %v2572_v33, %v4438_v18 }
 0x1d1   : > { %v2498_v48 = vpop.f32.mrb[7].mxu1  ;;  %v3278_v43 = vpop.f32.mrb[39].mxu0 }
 0x1d2   : > { %v3377_v37 = vadd.f32 %v3376_v47, %v3276_v0  ;;  %v3279_v15 = vadd.f32 %v3278_v43, %v3277_v34  ;;  %v2607_v0 = vld [vmem:[%s4505_s7 + $0x10] sm:$0xff] }
 0x1d4   : > { %v3378_v25 = vadd.f32 %v3377_v37, %v3370_v21  ;;  %v3383_v31 = vadd.f32 %v3382_v27, %v3279_v15  ;;  %2534 = vxpose.xlu0.b32.cont [2/8] (short) %v2526_v23, 128  ;;  %v2611_v15 = vmul.f32 %v2607_v0, %v4429_v14  ;;  %v2608_v23 = vld [vmem:[%s4505_s7 + $0x18] sm:$0xff] }
 0x1d6   : > { %v3384_v39 = vadd.f32 %v3383_v31, %v3371_v5  ;;  %v3280_v56 = vpop.f32.mrb[40].mxu0  ;;  %v2527_v38 = vadd.f32 %v3378_v25, %v3119_v22  ;;  %v2605_v5 = vld [vmem:[%s4505_s7] sm:$0xff] }
 0x1d7   : > { %v3281_v40 = vpop.f32.mrb[41].mxu0  ;;  %v2609_v16 = vmul.f32 %v2605_v5, %v4417_v1 }
 0x1d8   : > { %v3282_v49 = vadd.f32 %v3281_v40, %v3280_v56  ;;  %v3283_v6 = vpop.f32.mrb[42].mxu0  ;;  %2535 = vxpose.xlu0.b32.cont [3/8] (short) %v2527_v38, 128  ;;  %v2528_v24 = vadd.f32 %v3384_v39, %v3119_v22  ;;  %v2612_v40 = vmul.f32 %v2608_v23, %v4438_v18 }
 0x1d9   : > { %v3284_v35 = vpop.f32.mrb[43].mxu0 }
 0x1da   : > { %v3392_v44 = vadd.f32 %v3391_v20, %v3282_v49  ;;  %v3285_v46 = vadd.f32 %v3284_v35, %v3283_v6 }
 0x1dc   : > { %v3393_v50 = vadd.f32 %v3392_v44, %v2495_v32  ;;  %v3398_v53 = vadd.f32 %v3397_v59, %v3285_v46  ;;  %2536 = vxpose.xlu0.b32.cont [4/8] (short) %v2528_v24, 128 }
 0x1de   : > { %v3399_v54 = vadd.f32 %v3398_v53, %v2498_v48  ;;  %v3286_v55 = vpop.f32.mrb[44].mxu0  ;;  %v2529_v10 = vadd.f32 %v3393_v50, %v3119_v22 }
 0x1df   : > { %v3287_v47 = vpop.f32.mrb[45].mxu0 }
 0x1e0   : > { %v3288_v36 = vadd.f32 %v3287_v47, %v3286_v55  ;;  %v3289_v27 = vpop.f32.mrb[46].mxu0  ;;  %2537 = vxpose.xlu0.b32.cont [5/8] (short) %v2529_v10, 128  ;;  %v2530_v62 = vadd.f32 %v3399_v54, %v3119_v22 }
 0x1e1   : > { %v3290_v57 = vpop.f32.mrb[47].mxu0 }
 0x1e2   : > { %v3389_v61 = vadd.f32 %v3388_v11, %v3288_v36  ;;  %v3291_v58 = vadd.f32 %v3290_v57, %v3289_v27  ;;  %v4423_v11 = vld [vmem:[%s422_s25 + $0x8] sm:$0xff] }
 0x1e3   : > { %v2574_v12 = vmul.f32 %v2570_v7, %v4423_v11  ;;  %v2610_v30 = vmul.f32 %v2606_v19, %v4423_v11 }
 0x1e4   : > { %v3390_v41 = vadd.f32 %v3389_v61, %v3374_v3  ;;  %v3395_v28 = vadd.f32 %v3394_v45, %v3291_v58  ;;  %2538 = vxpose.xlu0.b32.cont [6/8] (short) %v2530_v62, 128 }
 0x1e6   : > { %v3396_v20 = vadd.f32 %v3395_v28, %v3375_v42  ;;  %v2531_v52 = vadd.f32 %v3390_v41, %v3119_v22 }
 0x1e8   : > { %2539 = vxpose.xlu0.b32.cont [7/8] (short) %v2531_v52, 128  ;;  %v2532_v59 = vadd.f32 %v3396_v20, %v3119_v22 }
 0x1ec   : > { %2540 = vxpose.xlu0.b32.end [8/8] (short) %v2532_v59, 128 }
 0x250   : > { %v2549_v4 = vpop.trf.xlu0 }
 0x251   : > { %v2577_v21 = vadd.f32 %v2573_v9, %v2549_v4 }
 0x253   : > { %v3120_v8 = vmul.f32 -1.442695, %v2577_v21 }
 0x254   : > { %v2550_v45 = vpop.trf.xlu0 }
 0x255   : > { %v2578_v17 = vadd.f32 %v2574_v12, %v2550_v45  ;;  %3528 = vpow2.f32 %v3120_v8 }
 0x257   : > { %v3121_v60 = vmul.f32 -1.442695, %v2578_v17 }
 0x258   : > { %v2551_v2 = vpop.trf.xlu0 }
 0x259   : > { %v2579_v3 = vadd.f32 %v2575_v63, %v2551_v2  ;;  %3530 = vpow2.f32 %v3121_v60 }
 0x25b   : > { %v3122_v42 = vmul.f32 -1.442695, %v2579_v3 }
 0x25c   : > { %v2552_v22 = vpop.trf.xlu0 }
 0x25d   : > { %v2580_v34 = vadd.f32 %v2576_v26, %v2552_v22  ;;  %v2658_v22 = vld [vmem:[%s4506_s8 + $0x8] sm:$0xff] }
 0x25f   : > { %v3123_v25 = vmul.f32 -1.442695, %v2580_v34  ;;  %v3529_v56 = vpop.eup %3528 }
 0x260   : > { %v2553_v29 = vpop.trf.xlu0  ;;  %v2593_v6 = vadd.f32 1.0, %v3529_v56 }
 0x261   : > { %v2613_v32 = vadd.f32 %v2609_v16, %v2553_v29 }
 0x263   : > { %v3124_v48 = vmul.f32 -1.442695, %v2613_v32  ;;  %v3531_v44 = vpop.eup %3530 }
 0x264   : > { %v2554_v43 = vpop.trf.xlu0  ;;  %v2594_v53 = vadd.f32 1.0, %v3531_v44 }
 0x265   : > { %3532 = vpow2.f32 %v3124_v48  ;;  %v2614_v37 = vadd.f32 %v2610_v30, %v2554_v43 }
 0x266   : > { %3534 = vpow2.f32 %v3122_v42  ;;  %v2659_v42 = vld [vmem:[%s4506_s8 + $0x10] sm:$0xff] }
 0x267   : > { %v3125_v31 = vmul.f32 -1.442695, %v2614_v37 }
 0x268   : > { %v2555_v39 = vpop.trf.xlu0 }
 0x269   : > { %3536 = vpow2.f32 %v3125_v31  ;;  %v2615_v38 = vadd.f32 %v2611_v15, %v2555_v39  ;;  %v2660_v39 = vld [vmem:[%s4506_s8 + $0x18] sm:$0xff] }
 0x26a   : > { %3538 = vpow2.f32 %v3123_v25 }
 0x26b   : > { %v3126_v49 = vmul.f32 -1.442695, %v2615_v38 }
 0x26c   : > { %v2556_v35 = vpop.trf.xlu0 }
 0x26d   : > { %3540 = vpow2.f32 %v3126_v49  ;;  %v2616_v46 = vadd.f32 %v2612_v40, %v2556_v35 }
 0x26e   : > { %3542 = vrcp.f32 %v2593_v6 }
 0x26f   : > { %v3533_v24 = vpop.eup %3532  ;;  %v3127_v50 = vmul.f32 -1.442695, %v2616_v46 }
 0x270   : > { %v2629_v54 = vadd.f32 1.0, %v3533_v24  ;;  %v2557_v55 = vpop.trf.xlu0  ;;  %v3535_v10 = vpop.eup %3534 }
 0x271   : > { %3544 = vpow2.f32 %v3127_v50  ;;  %v2595_v36 = vadd.f32 1.0, %v3535_v10 }
 0x272   : > { %3546 = vrcp.f32 %v2629_v54 }
 0x273   : > { %v3537_v47 = vpop.eup %3536  ;;  %3548 = vtanh.f32 %v2557_v55 }
 0x274   : > { %3550 = vrcp.f32 %v2594_v53  ;;  %v2630_v27 = vadd.f32 1.0, %v3537_v47  ;;  %v2558_v57 = vpop.trf.xlu0  ;;  %v3539_v61 = vpop.eup %3538 }
 0x275   : > { %3552 = vtanh.f32 %v2558_v57  ;;  %v2596_v62 = vadd.f32 1.0, %v3539_v61 }
 0x276   : > { %3554 = vrcp.f32 %v2630_v27 }
 0x277   : > { %v3541_v58 = vpop.eup %3540  ;;  %3556 = vrcp.f32 %v2595_v36 }
 0x278   : > { %v2631_v41 = vadd.f32 1.0, %v3541_v58  ;;  %v2559_v28 = vpop.trf.xlu0  ;;  %v3543_v20 = vpop.eup %3542 }
 0x279   : > { %3558 = vtanh.f32 %v2559_v28 }
 0x27a   : > { %3560 = vrcp.f32 %v2631_v41 }
 0x27b   : > { %v3545_v52 = vpop.eup %3544  ;;  %3562 = vrcp.f32 %v2596_v62 }
 0x27c   : > { %v3547_v59 = vpop.eup %3546  ;;  %v2632_v51 = vadd.f32 1.0, %v3545_v52  ;;  %v2560_v4 = vpop.trf.xlu0 }
 0x27d   : > { %v3549_v9 = vpop.eup %3548  ;;  %3564 = vtanh.f32 %v2560_v4  ;;  %v2645_v7 = vmul.f32 %v3547_v59, %v4417_v1 }
 0x27e   : > { %v3551_v45 = vpop.eup %3550  ;;  %3566 = vrcp.f32 %v2632_v51  ;;  %v2649_v21 = vmul.f32 %v3549_v9, %v3543_v20 }
 0x27f   : > { %v3553_v12 = vpop.eup %3552 }
 0x280   : > { %v3555_v2 = vpop.eup %3554  ;;  %v2653_v5 = vadd.f32 %v2649_v21, %v2645_v7  ;;  %v2561_v8 = vpop.trf.xlu0  ;;  %v2650_v17 = vmul.f32 %v3553_v12, %v3551_v45 }
 0x281   : > { %v2646_v1 = vmul.f32 %v3555_v2, %v4423_v11  ;;  %v3557_v63 = vpop.eup %3556 }
 0x282   : > { %v2661_v33 = vmul.f32 %v2657_v13, %v2653_v5  ;;  %2701 = vst.msk [vmem:[%s4462_s28] sm:$0xff] %vm633_vm6, %v2653_v5 }
 0x283   : > { %v3559_v16 = vpop.eup %3558  ;;  %v2654_v19 = vadd.f32 %v2650_v17, %v2646_v1 }
 0x284   : > { %v3561_v60 = vpop.eup %3560  ;;  %v2665_v3 = vadd.f32 %v2661_v33, %v2561_v8  ;;  %v2562_v26 = vpop.trf.xlu0  ;;  %v2651_v29 = vmul.f32 %v3559_v16, %v3557_v63 }
 0x285   : > { %v2662_v32 = vmul.f32 %v2658_v22, %v2654_v19  ;;  %2702 = vst.msk [vmem:[%s4462_s28 + $0x8] sm:$0xff] %vm633_vm6, %v2654_v19  ;;  %v2647_v11 = vmul.f32 %v3561_v60, %v4429_v14  ;;  %v3563_v30 = vpop.eup %3562 }
 0x286   : > { %v3128_v0 = vmul.f32 -1.442695, %v2665_v3 }
 0x287   : > { %v3565_v34 = vpop.eup %3564  ;;  %v2666_v48 = vadd.f32 %v2662_v32, %v2562_v26  ;;  %v2655_v43 = vadd.f32 %v2651_v29, %v2647_v11 }
 0x288   : > { %v3567_v37 = vpop.eup %3566  ;;  %3568 = vpow2.f32 %v3128_v0  ;;  %v2563_v15 = vpop.trf.xlu0  ;;  %v2652_v23 = vmul.f32 %v3565_v34, %v3563_v30 }
 0x289   : > { %v3129_v25 = vmul.f32 -1.442695, %v2666_v48  ;;  %v2663_v31 = vmul.f32 %v2659_v42, %v2655_v43  ;;  %2703 = vst.msk [vmem:[%s4462_s28 + $0x10] sm:$0xff] %vm633_vm6, %v2655_v43  ;;  %v2648_v14 = vmul.f32 %v3567_v37, %v4438_v18 }
 0x28b   : > { %3570 = vpow2.f32 %v3129_v25  ;;  %v2667_v56 = vadd.f32 %v2663_v31, %v2563_v15  ;;  %v2656_v38 = vadd.f32 %v2652_v23, %v2648_v14 }
 0x28c   : > { %v2564_v40 = vpop.trf.xlu0 }
 0x28d   : > { %v3130_v49 = vmul.f32 -1.442695, %v2667_v56  ;;  %v2664_v6 = vmul.f32 %v2660_v39, %v2656_v38  ;;  %2704 = vst.msk [vmem:[%s4462_s28 + $0x18] sm:$0xff] %vm633_vm6, %v2656_v38 }
 0x28f   : > { %3572 = vpow2.f32 %v3130_v49  ;;  %v2668_v35 = vadd.f32 %v2664_v6, %v2564_v40 }
 0x291   : > { %v3131_v44 = vmul.f32 -1.442695, %v2668_v35 }
 0x292   : > { %v3569_v46 = vpop.eup %3568 }
 0x293   : > { %v2681_v24 = vadd.f32 1.0, %v3569_v46  ;;  %3574 = vpow2.f32 %v3131_v44 }
 0x294   : > { %3576 = vtanh.f32 %v2653_v5 }
 0x295   : > { %v3571_v18 = vpop.eup %3570  ;;  %3578 = vrcp.f32 %v2681_v24 }
 0x296   : > { %v2682_v50 = vadd.f32 1.0, %v3571_v18  ;;  %3580 = vtanh.f32 %v2654_v19 }
 0x298   : > { %3582 = vrcp.f32 %v2682_v50 }
 0x299   : > { %v3573_v53 = vpop.eup %3572  ;;  %3584 = vtanh.f32 %v2655_v43 }
 0x29a   : > { %v2683_v54 = vadd.f32 1.0, %v3573_v53 }
 0x29c   : > { %3586 = vrcp.f32 %v2683_v54 }
 0x29d   : > { %v3575_v55 = vpop.eup %3574  ;;  %3588 = vtanh.f32 %v2656_v38 }
 0x29e   : > { %v3577_v10 = vpop.eup %3576  ;;  %v2684_v47 = vadd.f32 1.0, %v3575_v55 }
 0x29f   : > { %v3579_v36 = vpop.eup %3578 }
 0x2a0   : > { %v2697_v27 = vmul.f32 %v3579_v36, %v3577_v10  ;;  %3590 = vrcp.f32 %v2684_v47  ;;  %v3581_v57 = vpop.eup %3580 }
 0x2a2   : > { %v3583_v61 = vpop.eup %3582  ;;  %v3144_v58 = vpack.c.bf16 %v2697_v27, %v2697_v27 }
 0x2a3   : > { %v2698_v62 = vmul.f32 %v3583_v61, %v3581_v57  ;;  %v3585_v41 = vpop.eup %3584 }
 0x2a4   : > { %2722 = vst.msk [vmem:[%s432_s20] sm:$0xf] %vm2721_vm0, %v3144_v58 }
 0x2a5   : > { %v3145_v28 = vpack.c.bf16 %v2698_v62, %v2698_v62 }
 0x2a6   : > { %v3587_v20 = vpop.eup %3586 }
 0x2a7   : > { %2723 = vst.msk [vmem:[%s432_s20 + $0x4] sm:$0xf] %vm2721_vm0, %v3145_v28  ;;  %v2699_v52 = vmul.f32 %v3587_v20, %v3585_v41  ;;  %v3589_v59 = vpop.eup %3588 }
 0x2a9   : > { %v3146_v51 = vpack.c.bf16 %v2699_v52, %v2699_v52 }
 0x2aa   : > { %v3591_v4 = vpop.eup %3590 }
 0x2ab   : > { %2724 = vst.msk [vmem:[%s432_s20 + $0x8] sm:$0xf] %vm2721_vm0, %v3146_v51  ;;  %v2700_v9 = vmul.f32 %v3591_v4, %v3589_v59 }
 0x2ad   : > { %v3147_v7 = vpack.c.bf16 %v2700_v9, %v2700_v9 }
 0x2af   : > { %2725 = vst.msk [vmem:[%s432_s20 + $0xc] sm:$0xf] %vm2721_vm0, %v3147_v7 }
 0x2b0 PF: > { %s21_s13 = sadd.s32 1, %s3598_s13  }
 0x2b1   : > { %p18_p4 = scmp.ge.s32.totalorder %s21_s13, 4  }
 0x2b3   :  { %20 = sbr.rel (!%p18_p4) target bundleno = 1 (0x1), region = 112 }

</bundles_post_ra>
